<compile_context>
chip_gen: v7x
topology: tpu7x:2x2x1
jax: 0.10.0
libtpu: 0.0.40
codegen_flags: <defaults>
</compile_context>

<pallas_src>
import jax
import jax.numpy as jnp
from jax.experimental import pallas as pl
from jax.experimental.pallas import tpu as pltpu


def make_mha_kernel(n_head, d_k, d_v, eps):
    H = n_head

    def mha_kernel(q_ref, k_ref, v_ref, wq_ref, wk_ref, wv_ref, wo_ref,
                   g_ref, b_ref,
                   o_ref, attn_ref,
                   qh_st, kh_st, vh_st, ctx_acc, attn_st, res_st):
        TB, Lq, D = q_ref.shape
        Lk = k_ref.shape[1]

        # ---- fused Q/K/V projections: one MXU matmul each (bf16 in, f32 acc).
        # (1/sqrt(d_k) is already folded into wq on the host.)
        q_bf = q_ref[...]                               # (TB, Lq, D) bf16
        q2 = q_bf.reshape(TB * Lq, D)                   # leading-dim merge (free)
        k2 = k_ref[...].reshape(TB * Lk, D)
        v2 = v_ref[...].reshape(TB * Lk, D)

        qh_st[...] = jnp.dot(q2, wq_ref[...],
                             preferred_element_type=jnp.float32).astype(jnp.bfloat16)
        kh_st[...] = jnp.dot(k2, wk_ref[...],
                             preferred_element_type=jnp.float32).astype(jnp.bfloat16)
        vh_st[...] = jnp.dot(v2, wv_ref[...],
                             preferred_element_type=jnp.float32).astype(jnp.bfloat16)

        # TODO(synk): optional attention mask (masked_fill) and attention dropout
        # (training mode) from the PyTorch module are not wired through
        # (mask=None inference path only).

        # ---- per-head attention.  Head operands are re-read from VMEM scratch
        # (lane-range ref loads), the per-head context accumulates into a VMEM
        # slab, and the probabilities are staged in VMEM before being emitted
        # into the lane-dense attn output block, bounding vreg live ranges.
        for h in range(H):
            qh_h = qh_st[:, h * d_k:(h + 1) * d_k].reshape(TB, Lq, d_k)
            kh_h = kh_st[:, h * d_k:(h + 1) * d_k].reshape(TB, Lk, d_k)
            vh_h = vh_st[:, h * d_v:(h + 1) * d_v].reshape(TB, Lk, d_v)

            s = jnp.einsum('bqd,bkd->bqk', qh_h, kh_h,
                           preferred_element_type=jnp.float32)      # (TB,Lq,Lk)
            m = jnp.max(s, axis=-1, keepdims=True)
            e = jnp.exp(s - m)
            denom = jnp.sum(e, axis=-1, keepdims=True)
            attn_h = e * pl.reciprocal(denom, approx=True)          # f32 softmax

            ctx_h = jnp.einsum('bqk,bkv->bqv',
                               attn_h.astype(jnp.bfloat16), vh_h,
                               preferred_element_type=jnp.float32)  # (TB,Lq,dv)
            ctx_acc[:, h * d_v:(h + 1) * d_v] = (
                ctx_h.reshape(TB * Lq, d_v).astype(jnp.bfloat16))

            # Stage this head's probabilities, then repack them into the
            # lane-dense (TB, H*Lq*Lk) bf16 output block via static slices.
            attn_st[...] = attn_h.astype(jnp.bfloat16)
            base = h * Lq * Lk
            for qi in range(Lq):
                attn_ref[:, base + qi * Lk:base + (qi + 1) * Lk] = attn_st[:, qi, :]

        # ---- fused output projection + residual + LayerNorm (f32).
        out = jnp.dot(ctx_acc[...], wo_ref[...],
                      preferred_element_type=jnp.float32)           # (TB*Lq, D)
        out = out + q2.astype(jnp.float32)                          # residual

        mean = jnp.mean(out, axis=-1, keepdims=True)
        var = jnp.mean((out - mean) ** 2, axis=-1, keepdims=True)
        normed = (out - mean) * jax.lax.rsqrt(var + eps)
        res = normed * g_ref[...] + b_ref[...]                      # (TB*Lq, D)

        # Lane-dense store of the main output: stage (free leading-dim split),
        # then repack to the (TB, Lq*D) block with static slices.
        res_st[...] = res.reshape(TB, Lq, D)
        for qi in range(Lq):
            o_ref[:, qi * D:(qi + 1) * D] = res_st[:, qi, :]

    return mha_kernel


def _vmem_limit_bytes():
    """Scoped-VMEM request: ~3/4 of physical per-core VMEM, capped at 96 MiB.
    (v5e/v6e: 128 MiB -> 96 MiB; v7x: 64 MiB -> 48 MiB.)"""
    try:
        cap = int(pltpu.get_tpu_info().vmem_capacity_bytes)
    except Exception:
        cap = 64 * 1024 * 1024
    return min((cap * 3) // 4, 96 * 1024 * 1024)


def _pick_tb(B, Lq, Lk, D, H, d_k, d_v, vmem_budget,
             target_rows=512, min_grid_steps=2):
    """Batch tile TB: divisor of B that is a multiple of 8 (block-alignment rule)
    when possible, sized against the VMEM budget, a vreg-pressure row cap, and
    keeping >= min_grid_steps grid steps (pipelining / v7x megacore)."""
    def step_bytes(tb):
        q_b = tb * Lq * D * 2                      # bf16 q block
        kv_b = 2 * tb * Lk * D * 2                 # bf16 k + v blocks
        o_b = tb * Lq * D * 4                      # f32 lane-dense out block
        at_b = tb * H * Lq * Lk * 2                # bf16 lane-dense attn block
        w_b = (2 * D * H * d_k + 2 * D * H * d_v) * 2 + 2 * D * 4
        scr_b = ((tb * Lq * H * d_k + tb * Lk * H * d_k + tb * Lk * H * d_v
                  + tb * Lq * H * d_v) * 2
                 + tb * Lq * Lk * 2 + tb * Lq * D * 4)
        # headroom: f32 temporaries, lane padding of small-last-dim temps, spills
        body = 4 * (q_b + kv_b + o_b + at_b)
        return 2 * (q_b + kv_b + o_b + at_b + w_b) + scr_b + body

    cands = [t for t in range(8, B + 1, 8) if B % t == 0]
    if not cands:                                   # tiny / odd batch: one block
        return B
    best = cands[0]
    for t in cands:
        if step_bytes(t) > vmem_budget:
            continue
        if t * Lq > target_rows:                    # vreg-pressure cap
            continue
        if B // t < min_grid_steps:
            continue
        best = max(best, t)
    return best


def multi_head_attention(q, k, v, params, n_head, d_k, d_v):
    """q,k,v: (B, L, d_model) float32.

    Returns:
      out : (B, Lq, D) float32    -- LayerNorm(residual + MHA output)
      attn: (B, H, Lq, Lk) bfloat16 -- softmax attention probabilities
    """
    B, Lq, D = q.shape
    Lk = k.shape[1]
    assert k.shape[1] == v.shape[1]
    H = n_head

    inv_temp = 1.0 / (d_k ** 0.5)

    # PyTorch Linear is y = x @ W.T with W of shape (out, in); heads stay fused
    # along the output-feature axis (2-D weights for the MXU).
    wq = (params['w_qs'].T * inv_temp).astype(jnp.bfloat16)   # (D, H*dk), scaled
    wk = params['w_ks'].T.astype(jnp.bfloat16)                # (D, H*dk)
    wv = params['w_vs'].T.astype(jnp.bfloat16)                # (D, H*dv)
    wo = params['fc'].T.astype(jnp.bfloat16)                  # (H*dv, D)
    gamma = params['ln_gamma'].reshape(1, D).astype(jnp.float32)
    beta = params['ln_beta'].reshape(1, D).astype(jnp.float32)

    # bf16 streaming for all three inputs; the residual is rebuilt from bf16 q.
    qb = q.astype(jnp.bfloat16)
    kb = k.astype(jnp.bfloat16)
    vb = v.astype(jnp.bfloat16)

    vmem_limit = _vmem_limit_bytes()
    TB = _pick_tb(B, Lq, Lk, D, H, d_k, d_v, vmem_budget=(vmem_limit * 4) // 5)

    kernel = make_mha_kernel(H, d_k, d_v, eps=1e-6)

    out_shapes = (
        jax.ShapeDtypeStruct((B, Lq * D), jnp.float32),        # lane-dense out
        jax.ShapeDtypeStruct((B, H * Lq * Lk), jnp.bfloat16),  # lane-dense attn
    )

    grid_spec = pltpu.PrefetchScalarGridSpec(
        num_scalar_prefetch=0,
        grid=(B // TB,),
        in_specs=[
            pl.BlockSpec((TB, Lq, D), lambda b: (b, 0, 0)),
            pl.BlockSpec((TB, Lk, D), lambda b: (b, 0, 0)),
            pl.BlockSpec((TB, Lk, D), lambda b: (b, 0, 0)),
            pl.BlockSpec((D, H * d_k), lambda b: (0, 0)),
            pl.BlockSpec((D, H * d_k), lambda b: (0, 0)),
            pl.BlockSpec((D, H * d_v), lambda b: (0, 0)),
            pl.BlockSpec((H * d_v, D), lambda b: (0, 0)),
            pl.BlockSpec((1, D), lambda b: (0, 0)),
            pl.BlockSpec((1, D), lambda b: (0, 0)),
        ],
        out_specs=[
            pl.BlockSpec((TB, Lq * D), lambda b: (b, 0)),
            pl.BlockSpec((TB, H * Lq * Lk), lambda b: (b, 0)),
        ],
        scratch_shapes=[
            pltpu.VMEM((TB * Lq, H * d_k), jnp.bfloat16),   # qh stage
            pltpu.VMEM((TB * Lk, H * d_k), jnp.bfloat16),   # kh stage
            pltpu.VMEM((TB * Lk, H * d_v), jnp.bfloat16),   # vh stage
            pltpu.VMEM((TB * Lq, H * d_v), jnp.bfloat16),   # ctx accumulator
            pltpu.VMEM((TB, Lq, Lk), jnp.bfloat16),         # per-head attn stage
            pltpu.VMEM((TB, Lq, D), jnp.float32),           # LayerNorm result stage
        ],
    )

    o2, attn2 = pl.pallas_call(
        kernel,
        out_shape=out_shapes,
        grid_spec=grid_spec,
        compiler_params=pltpu.CompilerParams(
            dimension_semantics=("parallel",),
            vmem_limit_bytes=vmem_limit),
    )(qb, kb, vb, wq, wk, wv, wo, gamma, beta)

    # Free (row-major compatible) reshapes back to the module's logical shapes.
    out = o2.reshape(B, Lq, D)
    attn = attn2.reshape(B, H, Lq, Lk)
    return out, attn


def reference_mha(q, k, v, params, n_head, d_k, d_v):
    """Pure-JAX (f32) reference mirroring the PyTorch forward (mask=None)."""
    B, Lq, D = q.shape
    residual = q
    qh = (q @ params['w_qs'].T).reshape(B, Lq, n_head, d_k).transpose(0, 2, 1, 3)
    kh = (k @ params['w_ks'].T).reshape(B, k.shape[1], n_head, d_k).transpose(0, 2, 1, 3)
    vh = (v @ params['w_vs'].T).reshape(B, v.shape[1], n_head, d_v).transpose(0, 2, 1, 3)
    attn = jnp.einsum('bhqd,bhkd->bhqk', qh / (d_k ** 0.5), kh)
    attn = jax.nn.softmax(attn, axis=-1)
    out = jnp.einsum('bhqk,bhkv->bhqv', attn, vh)
    out = out.transpose(0, 2, 1, 3).reshape(B, Lq, n_head * d_v)
    out = out @ params['fc'].T + residual
    mean = jnp.mean(out, axis=-1, keepdims=True)
    var = jnp.mean((out - mean) ** 2, axis=-1, keepdims=True)
    out = (out - mean) / jnp.sqrt(var + 1e-6)
    out = out * params['ln_gamma'] + params['ln_beta']
    return out, attn


if __name__ == "__main__":
    B, Lq, Lk = 2, 8, 8
    d_model, n_head, d_k, d_v = 32, 4, 8, 8

    key = jax.random.PRNGKey(0)
    ks = jax.random.split(key, 8)
    scale = 0.1
    params = {
        # PyTorch Linear weight layout: (out_features, in_features)
        'w_qs': scale * jax.random.normal(ks[0], (n_head * d_k, d_model), jnp.float32),
        'w_ks': scale * jax.random.normal(ks[1], (n_head * d_k, d_model), jnp.float32),
        'w_vs': scale * jax.random.normal(ks[2], (n_head * d_v, d_model), jnp.float32),
        'fc':   scale * jax.random.normal(ks[3], (d_model, n_head * d_v), jnp.float32),
        'ln_gamma': jnp.ones((d_model,), jnp.float32),
        'ln_beta':  jnp.zeros((d_model,), jnp.float32),
    }

    q = jax.random.normal(ks[4], (B, Lq, d_model), jnp.float32)
    k = jax.random.normal(ks[5], (B, Lk, d_model), jnp.float32)
    v = jax.random.normal(ks[6], (B, Lk, d_model), jnp.float32)

    out, attn = multi_head_attention(q, k, v, params, n_head, d_k, d_v)
    out = jax.block_until_ready(out)
    attn = jax.block_until_ready(attn)

    out_expected, attn_expected = reference_mha(q, k, v, params, n_head, d_k, d_v)

    # bf16 streaming (q residual), bf16 MXU operands with f32 accumulation and a
    # bf16 attn output -> relaxed tolerances vs the f32 reference.
    assert jnp.allclose(out, out_expected, atol=4e-2, rtol=4e-2), \
        float(jnp.max(jnp.abs(out - out_expected)))
    assert jnp.allclose(attn.astype(jnp.float32), attn_expected,
                        atol=2e-2, rtol=2e-2), \
        float(jnp.max(jnp.abs(attn.astype(jnp.float32) - attn_expected)))

    print("KERNEL_OK")
</pallas_src>

<mosaic_0001>
module attributes {stable_mosaic.version = 11 : i64} {
  func.func @mha_kernel(%arg0: i32, %arg1: memref<2x8x32xbf16, #tpu.memory_space<vmem>>, %arg2: memref<2x8x32xbf16, #tpu.memory_space<vmem>>, %arg3: memref<2x8x32xbf16, #tpu.memory_space<vmem>>, %arg4: memref<32x32xbf16, #tpu.memory_space<vmem>>, %arg5: memref<32x32xbf16, #tpu.memory_space<vmem>>, %arg6: memref<32x32xbf16, #tpu.memory_space<vmem>>, %arg7: memref<32x32xbf16, #tpu.memory_space<vmem>>, %arg8: memref<1x32xf32, #tpu.memory_space<vmem>>, %arg9: memref<1x32xf32, #tpu.memory_space<vmem>>, %arg10: memref<2x256xf32, #tpu.memory_space<vmem>>, %arg11: memref<2x256xbf16, #tpu.memory_space<vmem>>, %arg12: memref<16x32xbf16, #tpu.memory_space<vmem>>, %arg13: memref<16x32xbf16, #tpu.memory_space<vmem>>, %arg14: memref<16x32xbf16, #tpu.memory_space<vmem>>, %arg15: memref<16x32xbf16, #tpu.memory_space<vmem>>, %arg16: memref<2x8x8xbf16, #tpu.memory_space<vmem>>, %arg17: memref<2x8x32xf32, #tpu.memory_space<vmem>>) attributes {dimension_semantics = [#tpu.dimension_semantics<parallel>], iteration_bounds = array<i64: 1>, scalar_prefetch = 0 : i64, scratch_operands = 6 : i64, tpu.core_type = #tpu.core_type<tc>, window_params = [{transform_indices = @transform_0, window_bounds = array<i64: 2, 8, 32>}, {transform_indices = @transform_1, window_bounds = array<i64: 2, 8, 32>}, {transform_indices = @transform_2, window_bounds = array<i64: 2, 8, 32>}, {pipeline_mode = #tpu.pipeline_mode<synchronous>, transform_indices = @transform_3, window_bounds = array<i64: 32, 32>}, {pipeline_mode = #tpu.pipeline_mode<synchronous>, transform_indices = @transform_4, window_bounds = array<i64: 32, 32>}, {pipeline_mode = #tpu.pipeline_mode<synchronous>, transform_indices = @transform_5, window_bounds = array<i64: 32, 32>}, {pipeline_mode = #tpu.pipeline_mode<synchronous>, transform_indices = @transform_6, window_bounds = array<i64: 32, 32>}, {pipeline_mode = #tpu.pipeline_mode<synchronous>, transform_indices = @transform_7, window_bounds = array<i64: 1, 32>}, {pipeline_mode = #tpu.pipeline_mode<synchronous>, transform_indices = @transform_8, window_bounds = array<i64: 1, 32>}, {transform_indices = @transform_9, window_bounds = array<i64: 2, 256>}, {transform_indices = @transform_10, window_bounds = array<i64: 2, 256>}]} {
    %c0 = arith.constant 0 : index
    %c0_0 = arith.constant 0 : index
    %c0_1 = arith.constant 0 : index
    %0 = vector.load %arg1[%c0, %c0_0, %c0_1] : memref<2x8x32xbf16, #tpu.memory_space<vmem>>, vector<2x8x32xbf16>
    %1 = vector.shape_cast %0 : vector<2x8x32xbf16> to vector<16x32xbf16>
    %c0_2 = arith.constant 0 : index
    %c0_3 = arith.constant 0 : index
    %c0_4 = arith.constant 0 : index
    %2 = vector.load %arg2[%c0_2, %c0_3, %c0_4] : memref<2x8x32xbf16, #tpu.memory_space<vmem>>, vector<2x8x32xbf16>
    %3 = vector.shape_cast %2 : vector<2x8x32xbf16> to vector<16x32xbf16>
    %c0_5 = arith.constant 0 : index
    %c0_6 = arith.constant 0 : index
    %c0_7 = arith.constant 0 : index
    %4 = vector.load %arg3[%c0_5, %c0_6, %c0_7] : memref<2x8x32xbf16, #tpu.memory_space<vmem>>, vector<2x8x32xbf16>
    %5 = vector.shape_cast %4 : vector<2x8x32xbf16> to vector<16x32xbf16>
    %c0_8 = arith.constant 0 : index
    %c0_9 = arith.constant 0 : index
    %6 = vector.load %arg4[%c0_8, %c0_9] : memref<32x32xbf16, #tpu.memory_space<vmem>>, vector<32x32xbf16>
    %cst = arith.constant dense<0.000000e+00> : vector<16x32xf32>
    %7 = tpu.matmul %1, %6, %cst {dimension_numbers = #tpu.dot_dimension_numbers<[1], [0], [0], [1], [0, 0, 1, 1], [], []>} : vector<16x32xbf16>, vector<32x32xbf16>, vector<16x32xf32> -> vector<16x32xf32>
    %8 = arith.truncf %7 : vector<16x32xf32> to vector<16x32xbf16>
    %c0_10 = arith.constant 0 : index
    %c0_11 = arith.constant 0 : index
    %9 = vector.load %arg12[%c0_10, %c0_11] : memref<16x32xbf16, #tpu.memory_space<vmem>>, vector<16x32xbf16>
    tpu.vector_store %arg12[%c0_10, %c0_11], %8 {strides = array<i32>} : memref<16x32xbf16, #tpu.memory_space<vmem>>, vector<16x32xbf16>,
    %c0_12 = arith.constant 0 : index
    %c0_13 = arith.constant 0 : index
    %10 = vector.load %arg5[%c0_12, %c0_13] : memref<32x32xbf16, #tpu.memory_space<vmem>>, vector<32x32xbf16>
    %cst_14 = arith.constant dense<0.000000e+00> : vector<16x32xf32>
    %11 = tpu.matmul %3, %10, %cst_14 {dimension_numbers = #tpu.dot_dimension_numbers<[1], [0], [0], [1], [0, 0, 1, 1], [], []>} : vector<16x32xbf16>, vector<32x32xbf16>, vector<16x32xf32> -> vector<16x32xf32>
    %12 = arith.truncf %11 : vector<16x32xf32> to vector<16x32xbf16>
    %c0_15 = arith.constant 0 : index
    %c0_16 = arith.constant 0 : index
    %13 = vector.load %arg13[%c0_15, %c0_16] : memref<16x32xbf16, #tpu.memory_space<vmem>>, vector<16x32xbf16>
    tpu.vector_store %arg13[%c0_15, %c0_16], %12 {strides = array<i32>} : memref<16x32xbf16, #tpu.memory_space<vmem>>, vector<16x32xbf16>,
    %c0_17 = arith.constant 0 : index
    %c0_18 = arith.constant 0 : index
    %14 = vector.load %arg6[%c0_17, %c0_18] : memref<32x32xbf16, #tpu.memory_space<vmem>>, vector<32x32xbf16>
    %cst_19 = arith.constant dense<0.000000e+00> : vector<16x32xf32>
    %15 = tpu.matmul %5, %14, %cst_19 {dimension_numbers = #tpu.dot_dimension_numbers<[1], [0], [0], [1], [0, 0, 1, 1], [], []>} : vector<16x32xbf16>, vector<32x32xbf16>, vector<16x32xf32> -> vector<16x32xf32>
    %16 = arith.truncf %15 : vector<16x32xf32> to vector<16x32xbf16>
    %c0_20 = arith.constant 0 : index
    %c0_21 = arith.constant 0 : index
    %17 = vector.load %arg14[%c0_20, %c0_21] : memref<16x32xbf16, #tpu.memory_space<vmem>>, vector<16x32xbf16>
    tpu.vector_store %arg14[%c0_20, %c0_21], %16 {strides = array<i32>} : memref<16x32xbf16, #tpu.memory_space<vmem>>, vector<16x32xbf16>,
    %c0_22 = arith.constant 0 : index
    %c0_23 = arith.constant 0 : index
    %18 = vector.load %arg12[%c0_22, %c0_23] : memref<16x32xbf16, #tpu.memory_space<vmem>>, vector<16x8xbf16>
    %19 = vector.shape_cast %18 : vector<16x8xbf16> to vector<2x8x8xbf16>
    %c0_24 = arith.constant 0 : index
    %c0_25 = arith.constant 0 : index
    %20 = vector.load %arg13[%c0_24, %c0_25] : memref<16x32xbf16, #tpu.memory_space<vmem>>, vector<16x8xbf16>
    %21 = vector.shape_cast %20 : vector<16x8xbf16> to vector<2x8x8xbf16>
    %c0_26 = arith.constant 0 : index
    %c0_27 = arith.constant 0 : index
    %22 = vector.load %arg14[%c0_26, %c0_27] : memref<16x32xbf16, #tpu.memory_space<vmem>>, vector<16x8xbf16>
    %23 = vector.shape_cast %22 : vector<16x8xbf16> to vector<2x8x8xbf16>
    "tpu.trace_start"() <{level = 10 : i32, message = "bqd,bkd->bqk"}> : () -> ()
    %cst_28 = arith.constant dense<0.000000e+00> : vector<2x8x8xf32>
    %24 = tpu.matmul %19, %21, %cst_28 {dimension_numbers = #tpu.dot_dimension_numbers<[2], [2], [1], [1], [0, 0, 0, 1, 1, 1], [0], [0]>} : vector<2x8x8xbf16>, vector<2x8x8xbf16>, vector<2x8x8xf32> -> vector<2x8x8xf32>
    "tpu.trace_stop"() : () -> ()
    %cst_29 = arith.constant dense<0xFF800000> : vector<2x8xf32>
    %25 = vector.multi_reduction <maximumf>, %24, %cst_29 [2] : vector<2x8x8xf32> to vector<2x8xf32>
    %26 = vector.shape_cast %25 : vector<2x8xf32> to vector<2x8x1xf32>
    %27 = vector.broadcast %26 : vector<2x8x1xf32> to vector<2x8x8xf32>
    %28 = arith.subf %24, %27 : vector<2x8x8xf32>
    %29 = math.exp %28 : vector<2x8x8xf32>
    %cst_30 = arith.constant dense<0.000000e+00> : vector<2x8xf32>
    %30 = vector.multi_reduction <add>, %29, %cst_30 [2] : vector<2x8x8xf32> to vector<2x8xf32>
    %31 = vector.shape_cast %30 : vector<2x8xf32> to vector<2x8x1xf32>
    %32 = tpu.reciprocal %31 {approx = true} : vector<2x8x1xf32> -> vector<2x8x1xf32>
    %33 = vector.broadcast %32 : vector<2x8x1xf32> to vector<2x8x8xf32>
    %34 = arith.mulf %29, %33 : vector<2x8x8xf32>
    %35 = arith.truncf %34 : vector<2x8x8xf32> to vector<2x8x8xbf16>
    "tpu.trace_start"() <{level = 10 : i32, message = "bqk,bkv->bqv"}> : () -> ()
    %cst_31 = arith.constant dense<0.000000e+00> : vector<2x8x8xf32>
    %36 = tpu.matmul %35, %23, %cst_31 {dimension_numbers = #tpu.dot_dimension_numbers<[2], [1], [1], [2], [0, 0, 0, 1, 1, 2], [0], [0]>} : vector<2x8x8xbf16>, vector<2x8x8xbf16>, vector<2x8x8xf32> -> vector<2x8x8xf32>
    "tpu.trace_stop"() : () -> ()
    %37 = vector.shape_cast %36 : vector<2x8x8xf32> to vector<16x8xf32>
    %38 = arith.truncf %37 : vector<16x8xf32> to vector<16x8xbf16>
    %c0_32 = arith.constant 0 : index
    %c0_33 = arith.constant 0 : index
    %39 = vector.load %arg15[%c0_32, %c0_33] : memref<16x32xbf16, #tpu.memory_space<vmem>>, vector<16x8xbf16>
    tpu.vector_store %arg15[%c0_32, %c0_33], %38 {strides = array<i32>} : memref<16x32xbf16, #tpu.memory_space<vmem>>, vector<16x8xbf16>,
    %40 = arith.truncf %34 : vector<2x8x8xf32> to vector<2x8x8xbf16>
    %c0_34 = arith.constant 0 : index
    %c0_35 = arith.constant 0 : index
    %c0_36 = arith.constant 0 : index
    %41 = vector.load %arg16[%c0_34, %c0_35, %c0_36] : memref<2x8x8xbf16, #tpu.memory_space<vmem>>, vector<2x8x8xbf16>
    tpu.vector_store %arg16[%c0_34, %c0_35, %c0_36], %40 {strides = array<i32>} : memref<2x8x8xbf16, #tpu.memory_space<vmem>>, vector<2x8x8xbf16>,
    %c0_37 = arith.constant 0 : index
    %c0_38 = arith.constant 0 : index
    %c0_39 = arith.constant 0 : index
    %42 = vector.load %arg16[%c0_37, %c0_38, %c0_39] : memref<2x8x8xbf16, #tpu.memory_space<vmem>>, vector<2x1x8xbf16>
    %43 = vector.shape_cast %42 : vector<2x1x8xbf16> to vector<2x8xbf16>
    %c0_40 = arith.constant 0 : index
    %c0_41 = arith.constant 0 : index
    %44 = vector.load %arg11[%c0_40, %c0_41] : memref<2x256xbf16, #tpu.memory_space<vmem>>, vector<2x8xbf16>
    tpu.vector_store %arg11[%c0_40, %c0_41], %43 {strides = array<i32>} : memref<2x256xbf16, #tpu.memory_space<vmem>>, vector<2x8xbf16>,
    %c0_42 = arith.constant 0 : index
    %c1 = arith.constant 1 : index
    %c0_43 = arith.constant 0 : index
    %45 = vector.load %arg16[%c0_42, %c1, %c0_43] : memref<2x8x8xbf16, #tpu.memory_space<vmem>>, vector<2x1x8xbf16>
    %46 = vector.shape_cast %45 : vector<2x1x8xbf16> to vector<2x8xbf16>
    %c0_44 = arith.constant 0 : index
    %c8 = arith.constant 8 : index
    %47 = vector.load %arg11[%c0_44, %c8] : memref<2x256xbf16, #tpu.memory_space<vmem>>, vector<2x8xbf16>
    tpu.vector_store %arg11[%c0_44, %c8], %46 {strides = array<i32>} : memref<2x256xbf16, #tpu.memory_space<vmem>>, vector<2x8xbf16>,
    %c0_45 = arith.constant 0 : index
    %c2 = arith.constant 2 : index
    %c0_46 = arith.constant 0 : index
    %48 = vector.load %arg16[%c0_45, %c2, %c0_46] : memref<2x8x8xbf16, #tpu.memory_space<vmem>>, vector<2x1x8xbf16>
    %49 = vector.shape_cast %48 : vector<2x1x8xbf16> to vector<2x8xbf16>
    %c0_47 = arith.constant 0 : index
    %c16 = arith.constant 16 : index
    %50 = vector.load %arg11[%c0_47, %c16] : memref<2x256xbf16, #tpu.memory_space<vmem>>, vector<2x8xbf16>
    tpu.vector_store %arg11[%c0_47, %c16], %49 {strides = array<i32>} : memref<2x256xbf16, #tpu.memory_space<vmem>>, vector<2x8xbf16>,
    %c0_48 = arith.constant 0 : index
    %c3 = arith.constant 3 : index
    %c0_49 = arith.constant 0 : index
    %51 = vector.load %arg16[%c0_48, %c3, %c0_49] : memref<2x8x8xbf16, #tpu.memory_space<vmem>>, vector<2x1x8xbf16>
    %52 = vector.shape_cast %51 : vector<2x1x8xbf16> to vector<2x8xbf16>
    %c0_50 = arith.constant 0 : index
    %c24 = arith.constant 24 : index
    %53 = vector.load %arg11[%c0_50, %c24] : memref<2x256xbf16, #tpu.memory_space<vmem>>, vector<2x8xbf16>
    tpu.vector_store %arg11[%c0_50, %c24], %52 {strides = array<i32>} : memref<2x256xbf16, #tpu.memory_space<vmem>>, vector<2x8xbf16>,
    %c0_51 = arith.constant 0 : index
    %c4 = arith.constant 4 : index
    %c0_52 = arith.constant 0 : index
    %54 = vector.load %arg16[%c0_51, %c4, %c0_52] : memref<2x8x8xbf16, #tpu.memory_space<vmem>>, vector<2x1x8xbf16>
    %55 = vector.shape_cast %54 : vector<2x1x8xbf16> to vector<2x8xbf16>
    %c0_53 = arith.constant 0 : index
    %c32 = arith.constant 32 : index
    %56 = vector.load %arg11[%c0_53, %c32] : memref<2x256xbf16, #tpu.memory_space<vmem>>, vector<2x8xbf16>
    tpu.vector_store %arg11[%c0_53, %c32], %55 {strides = array<i32>} : memref<2x256xbf16, #tpu.memory_space<vmem>>, vector<2x8xbf16>,
    %c0_54 = arith.constant 0 : index
    %c5 = arith.constant 5 : index
    %c0_55 = arith.constant 0 : index
    %57 = vector.load %arg16[%c0_54, %c5, %c0_55] : memref<2x8x8xbf16, #tpu.memory_space<vmem>>, vector<2x1x8xbf16>
    %58 = vector.shape_cast %57 : vector<2x1x8xbf16> to vector<2x8xbf16>
    %c0_56 = arith.constant 0 : index
    %c40 = arith.constant 40 : index
    %59 = vector.load %arg11[%c0_56, %c40] : memref<2x256xbf16, #tpu.memory_space<vmem>>, vector<2x8xbf16>
    tpu.vector_store %arg11[%c0_56, %c40], %58 {strides = array<i32>} : memref<2x256xbf16, #tpu.memory_space<vmem>>, vector<2x8xbf16>,
    %c0_57 = arith.constant 0 : index
    %c6 = arith.constant 6 : index
    %c0_58 = arith.constant 0 : index
    %60 = vector.load %arg16[%c0_57, %c6, %c0_58] : memref<2x8x8xbf16, #tpu.memory_space<vmem>>, vector<2x1x8xbf16>
    %61 = vector.shape_cast %60 : vector<2x1x8xbf16> to vector<2x8xbf16>
    %c0_59 = arith.constant 0 : index
    %c48 = arith.constant 48 : index
    %62 = vector.load %arg11[%c0_59, %c48] : memref<2x256xbf16, #tpu.memory_space<vmem>>, vector<2x8xbf16>
    tpu.vector_store %arg11[%c0_59, %c48], %61 {strides = array<i32>} : memref<2x256xbf16, #tpu.memory_space<vmem>>, vector<2x8xbf16>,
    %c0_60 = arith.constant 0 : index
    %c7 = arith.constant 7 : index
    %c0_61 = arith.constant 0 : index
    %63 = vector.load %arg16[%c0_60, %c7, %c0_61] : memref<2x8x8xbf16, #tpu.memory_space<vmem>>, vector<2x1x8xbf16>
    %64 = vector.shape_cast %63 : vector<2x1x8xbf16> to vector<2x8xbf16>
    %c0_62 = arith.constant 0 : index
    %c56 = arith.constant 56 : index
    %65 = vector.load %arg11[%c0_62, %c56] : memref<2x256xbf16, #tpu.memory_space<vmem>>, vector<2x8xbf16>
    tpu.vector_store %arg11[%c0_62, %c56], %64 {strides = array<i32>} : memref<2x256xbf16, #tpu.memory_space<vmem>>, vector<2x8xbf16>,
    %c0_63 = arith.constant 0 : index
    %c8_64 = arith.constant 8 : index
    %66 = vector.load %arg12[%c0_63, %c8_64] : memref<16x32xbf16, #tpu.memory_space<vmem>>, vector<16x8xbf16>
    %67 = vector.shape_cast %66 : vector<16x8xbf16> to vector<2x8x8xbf16>
    %c0_65 = arith.constant 0 : index
    %c8_66 = arith.constant 8 : index
    %68 = vector.load %arg13[%c0_65, %c8_66] : memref<16x32xbf16, #tpu.memory_space<vmem>>, vector<16x8xbf16>
    %69 = vector.shape_cast %68 : vector<16x8xbf16> to vector<2x8x8xbf16>
    %c0_67 = arith.constant 0 : index
    %c8_68 = arith.constant 8 : index
    %70 = vector.load %arg14[%c0_67, %c8_68] : memref<16x32xbf16, #tpu.memory_space<vmem>>, vector<16x8xbf16>
    %71 = vector.shape_cast %70 : vector<16x8xbf16> to vector<2x8x8xbf16>
    "tpu.trace_start"() <{level = 10 : i32, message = "bqd,bkd->bqk"}> : () -> ()
    %cst_69 = arith.constant dense<0.000000e+00> : vector<2x8x8xf32>
    %72 = tpu.matmul %67, %69, %cst_69 {dimension_numbers = #tpu.dot_dimension_numbers<[2], [2], [1], [1], [0, 0, 0, 1, 1, 1], [0], [0]>} : vector<2x8x8xbf16>, vector<2x8x8xbf16>, vector<2x8x8xf32> -> vector<2x8x8xf32>
    "tpu.trace_stop"() : () -> ()
    %cst_70 = arith.constant dense<0xFF800000> : vector<2x8xf32>
    %73 = vector.multi_reduction <maximumf>, %72, %cst_70 [2] : vector<2x8x8xf32> to vector<2x8xf32>
    %74 = vector.shape_cast %73 : vector<2x8xf32> to vector<2x8x1xf32>
    %75 = vector.broadcast %74 : vector<2x8x1xf32> to vector<2x8x8xf32>
    %76 = arith.subf %72, %75 : vector<2x8x8xf32>
    %77 = math.exp %76 : vector<2x8x8xf32>
    %cst_71 = arith.constant dense<0.000000e+00> : vector<2x8xf32>
    %78 = vector.multi_reduction <add>, %77, %cst_71 [2] : vector<2x8x8xf32> to vector<2x8xf32>
    %79 = vector.shape_cast %78 : vector<2x8xf32> to vector<2x8x1xf32>
    %80 = tpu.reciprocal %79 {approx = true} : vector<2x8x1xf32> -> vector<2x8x1xf32>
    %81 = vector.broadcast %80 : vector<2x8x1xf32> to vector<2x8x8xf32>
    %82 = arith.mulf %77, %81 : vector<2x8x8xf32>
    %83 = arith.truncf %82 : vector<2x8x8xf32> to vector<2x8x8xbf16>
    "tpu.trace_start"() <{level = 10 : i32, message = "bqk,bkv->bqv"}> : () -> ()
    %cst_72 = arith.constant dense<0.000000e+00> : vector<2x8x8xf32>
    %84 = tpu.matmul %83, %71, %cst_72 {dimension_numbers = #tpu.dot_dimension_numbers<[2], [1], [1], [2], [0, 0, 0, 1, 1, 2], [0], [0]>} : vector<2x8x8xbf16>, vector<2x8x8xbf16>, vector<2x8x8xf32> -> vector<2x8x8xf32>
    "tpu.trace_stop"() : () -> ()
    %85 = vector.shape_cast %84 : vector<2x8x8xf32> to vector<16x8xf32>
    %86 = arith.truncf %85 : vector<16x8xf32> to vector<16x8xbf16>
    %c0_73 = arith.constant 0 : index
    %c8_74 = arith.constant 8 : index
    %87 = vector.load %arg15[%c0_73, %c8_74] : memref<16x32xbf16, #tpu.memory_space<vmem>>, vector<16x8xbf16>
    tpu.vector_store %arg15[%c0_73, %c8_74], %86 {strides = array<i32>} : memref<16x32xbf16, #tpu.memory_space<vmem>>, vector<16x8xbf16>,
    %88 = arith.truncf %82 : vector<2x8x8xf32> to vector<2x8x8xbf16>
    %c0_75 = arith.constant 0 : index
    %c0_76 = arith.constant 0 : index
    %c0_77 = arith.constant 0 : index
    %89 = vector.load %arg16[%c0_75, %c0_76, %c0_77] : memref<2x8x8xbf16, #tpu.memory_space<vmem>>, vector<2x8x8xbf16>
    tpu.vector_store %arg16[%c0_75, %c0_76, %c0_77], %88 {strides = array<i32>} : memref<2x8x8xbf16, #tpu.memory_space<vmem>>, vector<2x8x8xbf16>,
    %c0_78 = arith.constant 0 : index
    %c0_79 = arith.constant 0 : index
    %c0_80 = arith.constant 0 : index
    %90 = vector.load %arg16[%c0_78, %c0_79, %c0_80] : memref<2x8x8xbf16, #tpu.memory_space<vmem>>, vector<2x1x8xbf16>
    %91 = vector.shape_cast %90 : vector<2x1x8xbf16> to vector<2x8xbf16>
    %c0_81 = arith.constant 0 : index
    %c64 = arith.constant 64 : index
    %92 = vector.load %arg11[%c0_81, %c64] : memref<2x256xbf16, #tpu.memory_space<vmem>>, vector<2x8xbf16>
    tpu.vector_store %arg11[%c0_81, %c64], %91 {strides = array<i32>} : memref<2x256xbf16, #tpu.memory_space<vmem>>, vector<2x8xbf16>,
    %c0_82 = arith.constant 0 : index
    %c1_83 = arith.constant 1 : index
    %c0_84 = arith.constant 0 : index
    %93 = vector.load %arg16[%c0_82, %c1_83, %c0_84] : memref<2x8x8xbf16, #tpu.memory_space<vmem>>, vector<2x1x8xbf16>
    %94 = vector.shape_cast %93 : vector<2x1x8xbf16> to vector<2x8xbf16>
    %c0_85 = arith.constant 0 : index
    %c72 = arith.constant 72 : index
    %95 = vector.load %arg11[%c0_85, %c72] : memref<2x256xbf16, #tpu.memory_space<vmem>>, vector<2x8xbf16>
    tpu.vector_store %arg11[%c0_85, %c72], %94 {strides = array<i32>} : memref<2x256xbf16, #tpu.memory_space<vmem>>, vector<2x8xbf16>,
    %c0_86 = arith.constant 0 : index
    %c2_87 = arith.constant 2 : index
    %c0_88 = arith.constant 0 : index
    %96 = vector.load %arg16[%c0_86, %c2_87, %c0_88] : memref<2x8x8xbf16, #tpu.memory_space<vmem>>, vector<2x1x8xbf16>
    %97 = vector.shape_cast %96 : vector<2x1x8xbf16> to vector<2x8xbf16>
    %c0_89 = arith.constant 0 : index
    %c80 = arith.constant 80 : index
    %98 = vector.load %arg11[%c0_89, %c80] : memref<2x256xbf16, #tpu.memory_space<vmem>>, vector<2x8xbf16>
    tpu.vector_store %arg11[%c0_89, %c80], %97 {strides = array<i32>} : memref<2x256xbf16, #tpu.memory_space<vmem>>, vector<2x8xbf16>,
    %c0_90 = arith.constant 0 : index
    %c3_91 = arith.constant 3 : index
    %c0_92 = arith.constant 0 : index
    %99 = vector.load %arg16[%c0_90, %c3_91, %c0_92] : memref<2x8x8xbf16, #tpu.memory_space<vmem>>, vector<2x1x8xbf16>
    %100 = vector.shape_cast %99 : vector<2x1x8xbf16> to vector<2x8xbf16>
    %c0_93 = arith.constant 0 : index
    %c88 = arith.constant 88 : index
    %101 = vector.load %arg11[%c0_93, %c88] : memref<2x256xbf16, #tpu.memory_space<vmem>>, vector<2x8xbf16>
    tpu.vector_store %arg11[%c0_93, %c88], %100 {strides = array<i32>} : memref<2x256xbf16, #tpu.memory_space<vmem>>, vector<2x8xbf16>,
    %c0_94 = arith.constant 0 : index
    %c4_95 = arith.constant 4 : index
    %c0_96 = arith.constant 0 : index
    %102 = vector.load %arg16[%c0_94, %c4_95, %c0_96] : memref<2x8x8xbf16, #tpu.memory_space<vmem>>, vector<2x1x8xbf16>
    %103 = vector.shape_cast %102 : vector<2x1x8xbf16> to vector<2x8xbf16>
    %c0_97 = arith.constant 0 : index
    %c96 = arith.constant 96 : index
    %104 = vector.load %arg11[%c0_97, %c96] : memref<2x256xbf16, #tpu.memory_space<vmem>>, vector<2x8xbf16>
    tpu.vector_store %arg11[%c0_97, %c96], %103 {strides = array<i32>} : memref<2x256xbf16, #tpu.memory_space<vmem>>, vector<2x8xbf16>,
    %c0_98 = arith.constant 0 : index
    %c5_99 = arith.constant 5 : index
    %c0_100 = arith.constant 0 : index
    %105 = vector.load %arg16[%c0_98, %c5_99, %c0_100] : memref<2x8x8xbf16, #tpu.memory_space<vmem>>, vector<2x1x8xbf16>
    %106 = vector.shape_cast %105 : vector<2x1x8xbf16> to vector<2x8xbf16>
    %c0_101 = arith.constant 0 : index
    %c104 = arith.constant 104 : index
    %107 = vector.load %arg11[%c0_101, %c104] : memref<2x256xbf16, #tpu.memory_space<vmem>>, vector<2x8xbf16>
    tpu.vector_store %arg11[%c0_101, %c104], %106 {strides = array<i32>} : memref<2x256xbf16, #tpu.memory_space<vmem>>, vector<2x8xbf16>,
    %c0_102 = arith.constant 0 : index
    %c6_103 = arith.constant 6 : index
    %c0_104 = arith.constant 0 : index
    %108 = vector.load %arg16[%c0_102, %c6_103, %c0_104] : memref<2x8x8xbf16, #tpu.memory_space<vmem>>, vector<2x1x8xbf16>
    %109 = vector.shape_cast %108 : vector<2x1x8xbf16> to vector<2x8xbf16>
    %c0_105 = arith.constant 0 : index
    %c112 = arith.constant 112 : index
    %110 = vector.load %arg11[%c0_105, %c112] : memref<2x256xbf16, #tpu.memory_space<vmem>>, vector<2x8xbf16>
    tpu.vector_store %arg11[%c0_105, %c112], %109 {strides = array<i32>} : memref<2x256xbf16, #tpu.memory_space<vmem>>, vector<2x8xbf16>,
    %c0_106 = arith.constant 0 : index
    %c7_107 = arith.constant 7 : index
    %c0_108 = arith.constant 0 : index
    %111 = vector.load %arg16[%c0_106, %c7_107, %c0_108] : memref<2x8x8xbf16, #tpu.memory_space<vmem>>, vector<2x1x8xbf16>
    %112 = vector.shape_cast %111 : vector<2x1x8xbf16> to vector<2x8xbf16>
    %c0_109 = arith.constant 0 : index
    %c120 = arith.constant 120 : index
    %113 = vector.load %arg11[%c0_109, %c120] : memref<2x256xbf16, #tpu.memory_space<vmem>>, vector<2x8xbf16>
    tpu.vector_store %arg11[%c0_109, %c120], %112 {strides = array<i32>} : memref<2x256xbf16, #tpu.memory_space<vmem>>, vector<2x8xbf16>,
    %c0_110 = arith.constant 0 : index
    %c16_111 = arith.constant 16 : index
    %114 = vector.load %arg12[%c0_110, %c16_111] : memref<16x32xbf16, #tpu.memory_space<vmem>>, vector<16x8xbf16>
    %115 = vector.shape_cast %114 : vector<16x8xbf16> to vector<2x8x8xbf16>
    %c0_112 = arith.constant 0 : index
    %c16_113 = arith.constant 16 : index
    %116 = vector.load %arg13[%c0_112, %c16_113] : memref<16x32xbf16, #tpu.memory_space<vmem>>, vector<16x8xbf16>
    %117 = vector.shape_cast %116 : vector<16x8xbf16> to vector<2x8x8xbf16>
    %c0_114 = arith.constant 0 : index
    %c16_115 = arith.constant 16 : index
    %118 = vector.load %arg14[%c0_114, %c16_115] : memref<16x32xbf16, #tpu.memory_space<vmem>>, vector<16x8xbf16>
    %119 = vector.shape_cast %118 : vector<16x8xbf16> to vector<2x8x8xbf16>
    "tpu.trace_start"() <{level = 10 : i32, message = "bqd,bkd->bqk"}> : () -> ()
    %cst_116 = arith.constant dense<0.000000e+00> : vector<2x8x8xf32>
    %120 = tpu.matmul %115, %117, %cst_116 {dimension_numbers = #tpu.dot_dimension_numbers<[2], [2], [1], [1], [0, 0, 0, 1, 1, 1], [0], [0]>} : vector<2x8x8xbf16>, vector<2x8x8xbf16>, vector<2x8x8xf32> -> vector<2x8x8xf32>
    "tpu.trace_stop"() : () -> ()
    %cst_117 = arith.constant dense<0xFF800000> : vector<2x8xf32>
    %121 = vector.multi_reduction <maximumf>, %120, %cst_117 [2] : vector<2x8x8xf32> to vector<2x8xf32>
    %122 = vector.shape_cast %121 : vector<2x8xf32> to vector<2x8x1xf32>
    %123 = vector.broadcast %122 : vector<2x8x1xf32> to vector<2x8x8xf32>
    %124 = arith.subf %120, %123 : vector<2x8x8xf32>
    %125 = math.exp %124 : vector<2x8x8xf32>
    %cst_118 = arith.constant dense<0.000000e+00> : vector<2x8xf32>
    %126 = vector.multi_reduction <add>, %125, %cst_118 [2] : vector<2x8x8xf32> to vector<2x8xf32>
    %127 = vector.shape_cast %126 : vector<2x8xf32> to vector<2x8x1xf32>
    %128 = tpu.reciprocal %127 {approx = true} : vector<2x8x1xf32> -> vector<2x8x1xf32>
    %129 = vector.broadcast %128 : vector<2x8x1xf32> to vector<2x8x8xf32>
    %130 = arith.mulf %125, %129 : vector<2x8x8xf32>
    %131 = arith.truncf %130 : vector<2x8x8xf32> to vector<2x8x8xbf16>
    "tpu.trace_start"() <{level = 10 : i32, message = "bqk,bkv->bqv"}> : () -> ()
    %cst_119 = arith.constant dense<0.000000e+00> : vector<2x8x8xf32>
    %132 = tpu.matmul %131, %119, %cst_119 {dimension_numbers = #tpu.dot_dimension_numbers<[2], [1], [1], [2], [0, 0, 0, 1, 1, 2], [0], [0]>} : vector<2x8x8xbf16>, vector<2x8x8xbf16>, vector<2x8x8xf32> -> vector<2x8x8xf32>
    "tpu.trace_stop"() : () -> ()
    %133 = vector.shape_cast %132 : vector<2x8x8xf32> to vector<16x8xf32>
    %134 = arith.truncf %133 : vector<16x8xf32> to vector<16x8xbf16>
    %c0_120 = arith.constant 0 : index
    %c16_121 = arith.constant 16 : index
    %135 = vector.load %arg15[%c0_120, %c16_121] : memref<16x32xbf16, #tpu.memory_space<vmem>>, vector<16x8xbf16>
    tpu.vector_store %arg15[%c0_120, %c16_121], %134 {strides = array<i32>} : memref<16x32xbf16, #tpu.memory_space<vmem>>, vector<16x8xbf16>,
    %136 = arith.truncf %130 : vector<2x8x8xf32> to vector<2x8x8xbf16>
    %c0_122 = arith.constant 0 : index
    %c0_123 = arith.constant 0 : index
    %c0_124 = arith.constant 0 : index
    %137 = vector.load %arg16[%c0_122, %c0_123, %c0_124] : memref<2x8x8xbf16, #tpu.memory_space<vmem>>, vector<2x8x8xbf16>
    tpu.vector_store %arg16[%c0_122, %c0_123, %c0_124], %136 {strides = array<i32>} : memref<2x8x8xbf16, #tpu.memory_space<vmem>>, vector<2x8x8xbf16>,
    %c0_125 = arith.constant 0 : index
    %c0_126 = arith.constant 0 : index
    %c0_127 = arith.constant 0 : index
    %138 = vector.load %arg16[%c0_125, %c0_126, %c0_127] : memref<2x8x8xbf16, #tpu.memory_space<vmem>>, vector<2x1x8xbf16>
    %139 = vector.shape_cast %138 : vector<2x1x8xbf16> to vector<2x8xbf16>
    %c0_128 = arith.constant 0 : index
    %c128 = arith.constant 128 : index
    %140 = vector.load %arg11[%c0_128, %c128] : memref<2x256xbf16, #tpu.memory_space<vmem>>, vector<2x8xbf16>
    tpu.vector_store %arg11[%c0_128, %c128], %139 {strides = array<i32>} : memref<2x256xbf16, #tpu.memory_space<vmem>>, vector<2x8xbf16>,
    %c0_129 = arith.constant 0 : index
    %c1_130 = arith.constant 1 : index
    %c0_131 = arith.constant 0 : index
    %141 = vector.load %arg16[%c0_129, %c1_130, %c0_131] : memref<2x8x8xbf16, #tpu.memory_space<vmem>>, vector<2x1x8xbf16>
    %142 = vector.shape_cast %141 : vector<2x1x8xbf16> to vector<2x8xbf16>
    %c0_132 = arith.constant 0 : index
    %c136 = arith.constant 136 : index
    %143 = vector.load %arg11[%c0_132, %c136] : memref<2x256xbf16, #tpu.memory_space<vmem>>, vector<2x8xbf16>
    tpu.vector_store %arg11[%c0_132, %c136], %142 {strides = array<i32>} : memref<2x256xbf16, #tpu.memory_space<vmem>>, vector<2x8xbf16>,
    %c0_133 = arith.constant 0 : index
    %c2_134 = arith.constant 2 : index
    %c0_135 = arith.constant 0 : index
    %144 = vector.load %arg16[%c0_133, %c2_134, %c0_135] : memref<2x8x8xbf16, #tpu.memory_space<vmem>>, vector<2x1x8xbf16>
    %145 = vector.shape_cast %144 : vector<2x1x8xbf16> to vector<2x8xbf16>
    %c0_136 = arith.constant 0 : index
    %c144 = arith.constant 144 : index
    %146 = vector.load %arg11[%c0_136, %c144] : memref<2x256xbf16, #tpu.memory_space<vmem>>, vector<2x8xbf16>
    tpu.vector_store %arg11[%c0_136, %c144], %145 {strides = array<i32>} : memref<2x256xbf16, #tpu.memory_space<vmem>>, vector<2x8xbf16>,
    %c0_137 = arith.constant 0 : index
    %c3_138 = arith.constant 3 : index
    %c0_139 = arith.constant 0 : index
    %147 = vector.load %arg16[%c0_137, %c3_138, %c0_139] : memref<2x8x8xbf16, #tpu.memory_space<vmem>>, vector<2x1x8xbf16>
    %148 = vector.shape_cast %147 : vector<2x1x8xbf16> to vector<2x8xbf16>
    %c0_140 = arith.constant 0 : index
    %c152 = arith.constant 152 : index
    %149 = vector.load %arg11[%c0_140, %c152] : memref<2x256xbf16, #tpu.memory_space<vmem>>, vector<2x8xbf16>
    tpu.vector_store %arg11[%c0_140, %c152], %148 {strides = array<i32>} : memref<2x256xbf16, #tpu.memory_space<vmem>>, vector<2x8xbf16>,
    %c0_141 = arith.constant 0 : index
    %c4_142 = arith.constant 4 : index
    %c0_143 = arith.constant 0 : index
    %150 = vector.load %arg16[%c0_141, %c4_142, %c0_143] : memref<2x8x8xbf16, #tpu.memory_space<vmem>>, vector<2x1x8xbf16>
    %151 = vector.shape_cast %150 : vector<2x1x8xbf16> to vector<2x8xbf16>
    %c0_144 = arith.constant 0 : index
    %c160 = arith.constant 160 : index
    %152 = vector.load %arg11[%c0_144, %c160] : memref<2x256xbf16, #tpu.memory_space<vmem>>, vector<2x8xbf16>
    tpu.vector_store %arg11[%c0_144, %c160], %151 {strides = array<i32>} : memref<2x256xbf16, #tpu.memory_space<vmem>>, vector<2x8xbf16>,
    %c0_145 = arith.constant 0 : index
    %c5_146 = arith.constant 5 : index
    %c0_147 = arith.constant 0 : index
    %153 = vector.load %arg16[%c0_145, %c5_146, %c0_147] : memref<2x8x8xbf16, #tpu.memory_space<vmem>>, vector<2x1x8xbf16>
    %154 = vector.shape_cast %153 : vector<2x1x8xbf16> to vector<2x8xbf16>
    %c0_148 = arith.constant 0 : index
    %c168 = arith.constant 168 : index
    %155 = vector.load %arg11[%c0_148, %c168] : memref<2x256xbf16, #tpu.memory_space<vmem>>, vector<2x8xbf16>
    tpu.vector_store %arg11[%c0_148, %c168], %154 {strides = array<i32>} : memref<2x256xbf16, #tpu.memory_space<vmem>>, vector<2x8xbf16>,
    %c0_149 = arith.constant 0 : index
    %c6_150 = arith.constant 6 : index
    %c0_151 = arith.constant 0 : index
    %156 = vector.load %arg16[%c0_149, %c6_150, %c0_151] : memref<2x8x8xbf16, #tpu.memory_space<vmem>>, vector<2x1x8xbf16>
    %157 = vector.shape_cast %156 : vector<2x1x8xbf16> to vector<2x8xbf16>
    %c0_152 = arith.constant 0 : index
    %c176 = arith.constant 176 : index
    %158 = vector.load %arg11[%c0_152, %c176] : memref<2x256xbf16, #tpu.memory_space<vmem>>, vector<2x8xbf16>
    tpu.vector_store %arg11[%c0_152, %c176], %157 {strides = array<i32>} : memref<2x256xbf16, #tpu.memory_space<vmem>>, vector<2x8xbf16>,
    %c0_153 = arith.constant 0 : index
    %c7_154 = arith.constant 7 : index
    %c0_155 = arith.constant 0 : index
    %159 = vector.load %arg16[%c0_153, %c7_154, %c0_155] : memref<2x8x8xbf16, #tpu.memory_space<vmem>>, vector<2x1x8xbf16>
    %160 = vector.shape_cast %159 : vector<2x1x8xbf16> to vector<2x8xbf16>
    %c0_156 = arith.constant 0 : index
    %c184 = arith.constant 184 : index
    %161 = vector.load %arg11[%c0_156, %c184] : memref<2x256xbf16, #tpu.memory_space<vmem>>, vector<2x8xbf16>
    tpu.vector_store %arg11[%c0_156, %c184], %160 {strides = array<i32>} : memref<2x256xbf16, #tpu.memory_space<vmem>>, vector<2x8xbf16>,
    %c0_157 = arith.constant 0 : index
    %c24_158 = arith.constant 24 : index
    %162 = vector.load %arg12[%c0_157, %c24_158] : memref<16x32xbf16, #tpu.memory_space<vmem>>, vector<16x8xbf16>
    %163 = vector.shape_cast %162 : vector<16x8xbf16> to vector<2x8x8xbf16>
    %c0_159 = arith.constant 0 : index
    %c24_160 = arith.constant 24 : index
    %164 = vector.load %arg13[%c0_159, %c24_160] : memref<16x32xbf16, #tpu.memory_space<vmem>>, vector<16x8xbf16>
    %165 = vector.shape_cast %164 : vector<16x8xbf16> to vector<2x8x8xbf16>
    %c0_161 = arith.constant 0 : index
    %c24_162 = arith.constant 24 : index
    %166 = vector.load %arg14[%c0_161, %c24_162] : memref<16x32xbf16, #tpu.memory_space<vmem>>, vector<16x8xbf16>
    %167 = vector.shape_cast %166 : vector<16x8xbf16> to vector<2x8x8xbf16>
    "tpu.trace_start"() <{level = 10 : i32, message = "bqd,bkd->bqk"}> : () -> ()
    %cst_163 = arith.constant dense<0.000000e+00> : vector<2x8x8xf32>
    %168 = tpu.matmul %163, %165, %cst_163 {dimension_numbers = #tpu.dot_dimension_numbers<[2], [2], [1], [1], [0, 0, 0, 1, 1, 1], [0], [0]>} : vector<2x8x8xbf16>, vector<2x8x8xbf16>, vector<2x8x8xf32> -> vector<2x8x8xf32>
    "tpu.trace_stop"() : () -> ()
    %cst_164 = arith.constant dense<0xFF800000> : vector<2x8xf32>
    %169 = vector.multi_reduction <maximumf>, %168, %cst_164 [2] : vector<2x8x8xf32> to vector<2x8xf32>
    %170 = vector.shape_cast %169 : vector<2x8xf32> to vector<2x8x1xf32>
    %171 = vector.broadcast %170 : vector<2x8x1xf32> to vector<2x8x8xf32>
    %172 = arith.subf %168, %171 : vector<2x8x8xf32>
    %173 = math.exp %172 : vector<2x8x8xf32>
    %cst_165 = arith.constant dense<0.000000e+00> : vector<2x8xf32>
    %174 = vector.multi_reduction <add>, %173, %cst_165 [2] : vector<2x8x8xf32> to vector<2x8xf32>
    %175 = vector.shape_cast %174 : vector<2x8xf32> to vector<2x8x1xf32>
    %176 = tpu.reciprocal %175 {approx = true} : vector<2x8x1xf32> -> vector<2x8x1xf32>
    %177 = vector.broadcast %176 : vector<2x8x1xf32> to vector<2x8x8xf32>
    %178 = arith.mulf %173, %177 : vector<2x8x8xf32>
    %179 = arith.truncf %178 : vector<2x8x8xf32> to vector<2x8x8xbf16>
    "tpu.trace_start"() <{level = 10 : i32, message = "bqk,bkv->bqv"}> : () -> ()
    %cst_166 = arith.constant dense<0.000000e+00> : vector<2x8x8xf32>
    %180 = tpu.matmul %179, %167, %cst_166 {dimension_numbers = #tpu.dot_dimension_numbers<[2], [1], [1], [2], [0, 0, 0, 1, 1, 2], [0], [0]>} : vector<2x8x8xbf16>, vector<2x8x8xbf16>, vector<2x8x8xf32> -> vector<2x8x8xf32>
    "tpu.trace_stop"() : () -> ()
    %181 = vector.shape_cast %180 : vector<2x8x8xf32> to vector<16x8xf32>
    %182 = arith.truncf %181 : vector<16x8xf32> to vector<16x8xbf16>
    %c0_167 = arith.constant 0 : index
    %c24_168 = arith.constant 24 : index
    %183 = vector.load %arg15[%c0_167, %c24_168] : memref<16x32xbf16, #tpu.memory_space<vmem>>, vector<16x8xbf16>
    tpu.vector_store %arg15[%c0_167, %c24_168], %182 {strides = array<i32>} : memref<16x32xbf16, #tpu.memory_space<vmem>>, vector<16x8xbf16>,
    %184 = arith.truncf %178 : vector<2x8x8xf32> to vector<2x8x8xbf16>
    %c0_169 = arith.constant 0 : index
    %c0_170 = arith.constant 0 : index
    %c0_171 = arith.constant 0 : index
    %185 = vector.load %arg16[%c0_169, %c0_170, %c0_171] : memref<2x8x8xbf16, #tpu.memory_space<vmem>>, vector<2x8x8xbf16>
    tpu.vector_store %arg16[%c0_169, %c0_170, %c0_171], %184 {strides = array<i32>} : memref<2x8x8xbf16, #tpu.memory_space<vmem>>, vector<2x8x8xbf16>,
    %c0_172 = arith.constant 0 : index
    %c0_173 = arith.constant 0 : index
    %c0_174 = arith.constant 0 : index
    %186 = vector.load %arg16[%c0_172, %c0_173, %c0_174] : memref<2x8x8xbf16, #tpu.memory_space<vmem>>, vector<2x1x8xbf16>
    %187 = vector.shape_cast %186 : vector<2x1x8xbf16> to vector<2x8xbf16>
    %c0_175 = arith.constant 0 : index
    %c192 = arith.constant 192 : index
    %188 = vector.load %arg11[%c0_175, %c192] : memref<2x256xbf16, #tpu.memory_space<vmem>>, vector<2x8xbf16>
    tpu.vector_store %arg11[%c0_175, %c192], %187 {strides = array<i32>} : memref<2x256xbf16, #tpu.memory_space<vmem>>, vector<2x8xbf16>,
    %c0_176 = arith.constant 0 : index
    %c1_177 = arith.constant 1 : index
    %c0_178 = arith.constant 0 : index
    %189 = vector.load %arg16[%c0_176, %c1_177, %c0_178] : memref<2x8x8xbf16, #tpu.memory_space<vmem>>, vector<2x1x8xbf16>
    %190 = vector.shape_cast %189 : vector<2x1x8xbf16> to vector<2x8xbf16>
    %c0_179 = arith.constant 0 : index
    %c200 = arith.constant 200 : index
    %191 = vector.load %arg11[%c0_179, %c200] : memref<2x256xbf16, #tpu.memory_space<vmem>>, vector<2x8xbf16>
    tpu.vector_store %arg11[%c0_179, %c200], %190 {strides = array<i32>} : memref<2x256xbf16, #tpu.memory_space<vmem>>, vector<2x8xbf16>,
    %c0_180 = arith.constant 0 : index
    %c2_181 = arith.constant 2 : index
    %c0_182 = arith.constant 0 : index
    %192 = vector.load %arg16[%c0_180, %c2_181, %c0_182] : memref<2x8x8xbf16, #tpu.memory_space<vmem>>, vector<2x1x8xbf16>
    %193 = vector.shape_cast %192 : vector<2x1x8xbf16> to vector<2x8xbf16>
    %c0_183 = arith.constant 0 : index
    %c208 = arith.constant 208 : index
    %194 = vector.load %arg11[%c0_183, %c208] : memref<2x256xbf16, #tpu.memory_space<vmem>>, vector<2x8xbf16>
    tpu.vector_store %arg11[%c0_183, %c208], %193 {strides = array<i32>} : memref<2x256xbf16, #tpu.memory_space<vmem>>, vector<2x8xbf16>,
    %c0_184 = arith.constant 0 : index
    %c3_185 = arith.constant 3 : index
    %c0_186 = arith.constant 0 : index
    %195 = vector.load %arg16[%c0_184, %c3_185, %c0_186] : memref<2x8x8xbf16, #tpu.memory_space<vmem>>, vector<2x1x8xbf16>
    %196 = vector.shape_cast %195 : vector<2x1x8xbf16> to vector<2x8xbf16>
    %c0_187 = arith.constant 0 : index
    %c216 = arith.constant 216 : index
    %197 = vector.load %arg11[%c0_187, %c216] : memref<2x256xbf16, #tpu.memory_space<vmem>>, vector<2x8xbf16>
    tpu.vector_store %arg11[%c0_187, %c216], %196 {strides = array<i32>} : memref<2x256xbf16, #tpu.memory_space<vmem>>, vector<2x8xbf16>,
    %c0_188 = arith.constant 0 : index
    %c4_189 = arith.constant 4 : index
    %c0_190 = arith.constant 0 : index
    %198 = vector.load %arg16[%c0_188, %c4_189, %c0_190] : memref<2x8x8xbf16, #tpu.memory_space<vmem>>, vector<2x1x8xbf16>
    %199 = vector.shape_cast %198 : vector<2x1x8xbf16> to vector<2x8xbf16>
    %c0_191 = arith.constant 0 : index
    %c224 = arith.constant 224 : index
    %200 = vector.load %arg11[%c0_191, %c224] : memref<2x256xbf16, #tpu.memory_space<vmem>>, vector<2x8xbf16>
    tpu.vector_store %arg11[%c0_191, %c224], %199 {strides = array<i32>} : memref<2x256xbf16, #tpu.memory_space<vmem>>, vector<2x8xbf16>,
    %c0_192 = arith.constant 0 : index
    %c5_193 = arith.constant 5 : index
    %c0_194 = arith.constant 0 : index
    %201 = vector.load %arg16[%c0_192, %c5_193, %c0_194] : memref<2x8x8xbf16, #tpu.memory_space<vmem>>, vector<2x1x8xbf16>
    %202 = vector.shape_cast %201 : vector<2x1x8xbf16> to vector<2x8xbf16>
    %c0_195 = arith.constant 0 : index
    %c232 = arith.constant 232 : index
    %203 = vector.load %arg11[%c0_195, %c232] : memref<2x256xbf16, #tpu.memory_space<vmem>>, vector<2x8xbf16>
    tpu.vector_store %arg11[%c0_195, %c232], %202 {strides = array<i32>} : memref<2x256xbf16, #tpu.memory_space<vmem>>, vector<2x8xbf16>,
    %c0_196 = arith.constant 0 : index
    %c6_197 = arith.constant 6 : index
    %c0_198 = arith.constant 0 : index
    %204 = vector.load %arg16[%c0_196, %c6_197, %c0_198] : memref<2x8x8xbf16, #tpu.memory_space<vmem>>, vector<2x1x8xbf16>
    %205 = vector.shape_cast %204 : vector<2x1x8xbf16> to vector<2x8xbf16>
    %c0_199 = arith.constant 0 : index
    %c240 = arith.constant 240 : index
    %206 = vector.load %arg11[%c0_199, %c240] : memref<2x256xbf16, #tpu.memory_space<vmem>>, vector<2x8xbf16>
    tpu.vector_store %arg11[%c0_199, %c240], %205 {strides = array<i32>} : memref<2x256xbf16, #tpu.memory_space<vmem>>, vector<2x8xbf16>,
    %c0_200 = arith.constant 0 : index
    %c7_201 = arith.constant 7 : index
    %c0_202 = arith.constant 0 : index
    %207 = vector.load %arg16[%c0_200, %c7_201, %c0_202] : memref<2x8x8xbf16, #tpu.memory_space<vmem>>, vector<2x1x8xbf16>
    %208 = vector.shape_cast %207 : vector<2x1x8xbf16> to vector<2x8xbf16>
    %c0_203 = arith.constant 0 : index
    %c248 = arith.constant 248 : index
    %209 = vector.load %arg11[%c0_203, %c248] : memref<2x256xbf16, #tpu.memory_space<vmem>>, vector<2x8xbf16>
    tpu.vector_store %arg11[%c0_203, %c248], %208 {strides = array<i32>} : memref<2x256xbf16, #tpu.memory_space<vmem>>, vector<2x8xbf16>,
    %c0_204 = arith.constant 0 : index
    %c0_205 = arith.constant 0 : index
    %210 = vector.load %arg15[%c0_204, %c0_205] : memref<16x32xbf16, #tpu.memory_space<vmem>>, vector<16x32xbf16>
    %c0_206 = arith.constant 0 : index
    %c0_207 = arith.constant 0 : index
    %211 = vector.load %arg7[%c0_206, %c0_207] : memref<32x32xbf16, #tpu.memory_space<vmem>>, vector<32x32xbf16>
    %cst_208 = arith.constant dense<0.000000e+00> : vector<16x32xf32>
    %212 = tpu.matmul %210, %211, %cst_208 {dimension_numbers = #tpu.dot_dimension_numbers<[1], [0], [0], [1], [0, 0, 1, 1], [], []>} : vector<16x32xbf16>, vector<32x32xbf16>, vector<16x32xf32> -> vector<16x32xf32>
    %213 = arith.extf %1 : vector<16x32xbf16> to vector<16x32xf32>
    %214 = arith.addf %212, %213 : vector<16x32xf32>
    %cst_209 = arith.constant dense<0.000000e+00> : vector<16xf32>
    %215 = vector.multi_reduction <add>, %214, %cst_209 [1] : vector<16x32xf32> to vector<16xf32>
    %216 = vector.shape_cast %215 : vector<16xf32> to vector<16x1xf32>
    %cst_210 = arith.constant 3.200000e+01 : f32
    %217 = vector.broadcast %cst_210 : f32 to vector<16x1xf32>
    %218 = arith.divf %216, %217 : vector<16x1xf32>
    %219 = vector.broadcast %218 : vector<16x1xf32> to vector<16x32xf32>
    %220 = arith.subf %214, %219 : vector<16x32xf32>
    %221 = arith.mulf %220, %220 : vector<16x32xf32>
    %cst_211 = arith.constant dense<0.000000e+00> : vector<16xf32>
    %222 = vector.multi_reduction <add>, %221, %cst_211 [1] : vector<16x32xf32> to vector<16xf32>
    %223 = vector.shape_cast %222 : vector<16xf32> to vector<16x1xf32>
    %cst_212 = arith.constant 3.200000e+01 : f32
    %224 = vector.broadcast %cst_212 : f32 to vector<16x1xf32>
    %225 = arith.divf %223, %224 : vector<16x1xf32>
    %226 = vector.broadcast %218 : vector<16x1xf32> to vector<16x32xf32>
    %227 = arith.subf %214, %226 : vector<16x32xf32>
    %cst_213 = arith.constant 9.99999997E-7 : f32
    %228 = vector.broadcast %cst_213 : f32 to vector<16x1xf32>
    %229 = arith.addf %225, %228 : vector<16x1xf32>
    %230 = math.rsqrt %229 : vector<16x1xf32>
    %231 = vector.broadcast %230 : vector<16x1xf32> to vector<16x32xf32>
    %232 = arith.mulf %227, %231 : vector<16x32xf32>
    %c0_214 = arith.constant 0 : index
    %c0_215 = arith.constant 0 : index
    %233 = vector.load %arg8[%c0_214, %c0_215] : memref<1x32xf32, #tpu.memory_space<vmem>>, vector<1x32xf32>
    %234 = vector.broadcast %233 : vector<1x32xf32> to vector<16x32xf32>
    %235 = arith.mulf %232, %234 : vector<16x32xf32>
    %c0_216 = arith.constant 0 : index
    %c0_217 = arith.constant 0 : index
    %236 = vector.load %arg9[%c0_216, %c0_217] : memref<1x32xf32, #tpu.memory_space<vmem>>, vector<1x32xf32>
    %237 = vector.broadcast %236 : vector<1x32xf32> to vector<16x32xf32>
    %238 = arith.addf %235, %237 : vector<16x32xf32>
    %239 = vector.shape_cast %238 : vector<16x32xf32> to vector<2x8x32xf32>
    %c0_218 = arith.constant 0 : index
    %c0_219 = arith.constant 0 : index
    %c0_220 = arith.constant 0 : index
    %240 = vector.load %arg17[%c0_218, %c0_219, %c0_220] : memref<2x8x32xf32, #tpu.memory_space<vmem>>, vector<2x8x32xf32>
    tpu.vector_store %arg17[%c0_218, %c0_219, %c0_220], %239 {strides = array<i32>} : memref<2x8x32xf32, #tpu.memory_space<vmem>>, vector<2x8x32xf32>,
    %c0_221 = arith.constant 0 : index
    %c0_222 = arith.constant 0 : index
    %c0_223 = arith.constant 0 : index
    %241 = vector.load %arg17[%c0_221, %c0_222, %c0_223] : memref<2x8x32xf32, #tpu.memory_space<vmem>>, vector<2x1x32xf32>
    %242 = vector.shape_cast %241 : vector<2x1x32xf32> to vector<2x32xf32>
    %c0_224 = arith.constant 0 : index
    %c0_225 = arith.constant 0 : index
    %243 = vector.load %arg10[%c0_224, %c0_225] : memref<2x256xf32, #tpu.memory_space<vmem>>, vector<2x32xf32>
    tpu.vector_store %arg10[%c0_224, %c0_225], %242 {strides = array<i32>} : memref<2x256xf32, #tpu.memory_space<vmem>>, vector<2x32xf32>,
    %c0_226 = arith.constant 0 : index
    %c1_227 = arith.constant 1 : index
    %c0_228 = arith.constant 0 : index
    %244 = vector.load %arg17[%c0_226, %c1_227, %c0_228] : memref<2x8x32xf32, #tpu.memory_space<vmem>>, vector<2x1x32xf32>
    %245 = vector.shape_cast %244 : vector<2x1x32xf32> to vector<2x32xf32>
    %c0_229 = arith.constant 0 : index
    %c32_230 = arith.constant 32 : index
    %246 = vector.load %arg10[%c0_229, %c32_230] : memref<2x256xf32, #tpu.memory_space<vmem>>, vector<2x32xf32>
    tpu.vector_store %arg10[%c0_229, %c32_230], %245 {strides = array<i32>} : memref<2x256xf32, #tpu.memory_space<vmem>>, vector<2x32xf32>,
    %c0_231 = arith.constant 0 : index
    %c2_232 = arith.constant 2 : index
    %c0_233 = arith.constant 0 : index
    %247 = vector.load %arg17[%c0_231, %c2_232, %c0_233] : memref<2x8x32xf32, #tpu.memory_space<vmem>>, vector<2x1x32xf32>
    %248 = vector.shape_cast %247 : vector<2x1x32xf32> to vector<2x32xf32>
    %c0_234 = arith.constant 0 : index
    %c64_235 = arith.constant 64 : index
    %249 = vector.load %arg10[%c0_234, %c64_235] : memref<2x256xf32, #tpu.memory_space<vmem>>, vector<2x32xf32>
    tpu.vector_store %arg10[%c0_234, %c64_235], %248 {strides = array<i32>} : memref<2x256xf32, #tpu.memory_space<vmem>>, vector<2x32xf32>,
    %c0_236 = arith.constant 0 : index
    %c3_237 = arith.constant 3 : index
    %c0_238 = arith.constant 0 : index
    %250 = vector.load %arg17[%c0_236, %c3_237, %c0_238] : memref<2x8x32xf32, #tpu.memory_space<vmem>>, vector<2x1x32xf32>
    %251 = vector.shape_cast %250 : vector<2x1x32xf32> to vector<2x32xf32>
    %c0_239 = arith.constant 0 : index
    %c96_240 = arith.constant 96 : index
    %252 = vector.load %arg10[%c0_239, %c96_240] : memref<2x256xf32, #tpu.memory_space<vmem>>, vector<2x32xf32>
    tpu.vector_store %arg10[%c0_239, %c96_240], %251 {strides = array<i32>} : memref<2x256xf32, #tpu.memory_space<vmem>>, vector<2x32xf32>,
    %c0_241 = arith.constant 0 : index
    %c4_242 = arith.constant 4 : index
    %c0_243 = arith.constant 0 : index
    %253 = vector.load %arg17[%c0_241, %c4_242, %c0_243] : memref<2x8x32xf32, #tpu.memory_space<vmem>>, vector<2x1x32xf32>
    %254 = vector.shape_cast %253 : vector<2x1x32xf32> to vector<2x32xf32>
    %c0_244 = arith.constant 0 : index
    %c128_245 = arith.constant 128 : index
    %255 = vector.load %arg10[%c0_244, %c128_245] : memref<2x256xf32, #tpu.memory_space<vmem>>, vector<2x32xf32>
    tpu.vector_store %arg10[%c0_244, %c128_245], %254 {strides = array<i32>} : memref<2x256xf32, #tpu.memory_space<vmem>>, vector<2x32xf32>,
    %c0_246 = arith.constant 0 : index
    %c5_247 = arith.constant 5 : index
    %c0_248 = arith.constant 0 : index
    %256 = vector.load %arg17[%c0_246, %c5_247, %c0_248] : memref<2x8x32xf32, #tpu.memory_space<vmem>>, vector<2x1x32xf32>
    %257 = vector.shape_cast %256 : vector<2x1x32xf32> to vector<2x32xf32>
    %c0_249 = arith.constant 0 : index
    %c160_250 = arith.constant 160 : index
    %258 = vector.load %arg10[%c0_249, %c160_250] : memref<2x256xf32, #tpu.memory_space<vmem>>, vector<2x32xf32>
    tpu.vector_store %arg10[%c0_249, %c160_250], %257 {strides = array<i32>} : memref<2x256xf32, #tpu.memory_space<vmem>>, vector<2x32xf32>,
    %c0_251 = arith.constant 0 : index
    %c6_252 = arith.constant 6 : index
    %c0_253 = arith.constant 0 : index
    %259 = vector.load %arg17[%c0_251, %c6_252, %c0_253] : memref<2x8x32xf32, #tpu.memory_space<vmem>>, vector<2x1x32xf32>
    %260 = vector.shape_cast %259 : vector<2x1x32xf32> to vector<2x32xf32>
    %c0_254 = arith.constant 0 : index
    %c192_255 = arith.constant 192 : index
    %261 = vector.load %arg10[%c0_254, %c192_255] : memref<2x256xf32, #tpu.memory_space<vmem>>, vector<2x32xf32>
    tpu.vector_store %arg10[%c0_254, %c192_255], %260 {strides = array<i32>} : memref<2x256xf32, #tpu.memory_space<vmem>>, vector<2x32xf32>,
    %c0_256 = arith.constant 0 : index
    %c7_257 = arith.constant 7 : index
    %c0_258 = arith.constant 0 : index
    %262 = vector.load %arg17[%c0_256, %c7_257, %c0_258] : memref<2x8x32xf32, #tpu.memory_space<vmem>>, vector<2x1x32xf32>
    %263 = vector.shape_cast %262 : vector<2x1x32xf32> to vector<2x32xf32>
    %c0_259 = arith.constant 0 : index
    %c224_260 = arith.constant 224 : index
    %264 = vector.load %arg10[%c0_259, %c224_260] : memref<2x256xf32, #tpu.memory_space<vmem>>, vector<2x32xf32>
    tpu.vector_store %arg10[%c0_259, %c224_260], %263 {strides = array<i32>} : memref<2x256xf32, #tpu.memory_space<vmem>>, vector<2x32xf32>,
    return
  }
  func.func @transform_0(%arg0: i32) -> (i32, i32, i32) {
    %c0_i32 = arith.constant 0 : i32
    %c0_i32_0 = arith.constant 0 : i32
    %c0_i32_1 = arith.constant 0 : i32
    return %arg0, %c0_i32, %c0_i32_0 : i32, i32, i32
  }
  func.func @transform_1(%arg0: i32) -> (i32, i32, i32) {
    %c0_i32 = arith.constant 0 : i32
    %c0_i32_0 = arith.constant 0 : i32
    %c0_i32_1 = arith.constant 0 : i32
    return %arg0, %c0_i32, %c0_i32_0 : i32, i32, i32
  }
  func.func @transform_2(%arg0: i32) -> (i32, i32, i32) {
    %c0_i32 = arith.constant 0 : i32
    %c0_i32_0 = arith.constant 0 : i32
    %c0_i32_1 = arith.constant 0 : i32
    return %arg0, %c0_i32, %c0_i32_0 : i32, i32, i32
  }
  func.func @transform_3(%arg0: i32) -> (i32, i32) {
    %c0_i32 = arith.constant 0 : i32
    %c0_i32_0 = arith.constant 0 : i32
    %c0_i32_1 = arith.constant 0 : i32
    return %c0_i32, %c0_i32_0 : i32, i32
  }
  func.func @transform_4(%arg0: i32) -> (i32, i32) {
    %c0_i32 = arith.constant 0 : i32
    %c0_i32_0 = arith.constant 0 : i32
    %c0_i32_1 = arith.constant 0 : i32
    return %c0_i32, %c0_i32_0 : i32, i32
  }
  func.func @transform_5(%arg0: i32) -> (i32, i32) {
    %c0_i32 = arith.constant 0 : i32
    %c0_i32_0 = arith.constant 0 : i32
    %c0_i32_1 = arith.constant 0 : i32
    return %c0_i32, %c0_i32_0 : i32, i32
  }
  func.func @transform_6(%arg0: i32) -> (i32, i32) {
    %c0_i32 = arith.constant 0 : i32
    %c0_i32_0 = arith.constant 0 : i32
    %c0_i32_1 = arith.constant 0 : i32
    return %c0_i32, %c0_i32_0 : i32, i32
  }
  func.func @transform_7(%arg0: i32) -> (i32, i32) {
    %c0_i32 = arith.constant 0 : i32
    %c0_i32_0 = arith.constant 0 : i32
    %c0_i32_1 = arith.constant 0 : i32
    return %c0_i32, %c0_i32_0 : i32, i32
  }
  func.func @transform_8(%arg0: i32) -> (i32, i32) {
    %c0_i32 = arith.constant 0 : i32
    %c0_i32_0 = arith.constant 0 : i32
    %c0_i32_1 = arith.constant 0 : i32
    return %c0_i32, %c0_i32_0 : i32, i32
  }
  func.func @transform_9(%arg0: i32) -> (i32, i32) {
    %c0_i32 = arith.constant 0 : i32
    %c0_i32_0 = arith.constant 0 : i32
    return %arg0, %c0_i32 : i32, i32
  }
  func.func @transform_10(%arg0: i32) -> (i32, i32) {
    %c0_i32 = arith.constant 0 : i32
    %c0_i32_0 = arith.constant 0 : i32
    return %arg0, %c0_i32 : i32, i32
  }
}

</mosaic_0001>

<bundles_post_ra>
// kernel: tpu_custom_call.1
= control target key start
LH: loop header
LB: loop body
LE: loop exit
PB: predicated region body
PF: predicated region fallthrough
CT: control target
= control target key end

     0   :  { %16 = vsyncpa [#allocation9], 0  ;;  %s5834_s0 = inlined_call_operand.hbm [shape: bf16[2,8,32], index: 0, kind: input, shape index: {}]   ;;  %s5835_s1 = inlined_call_operand.hbm [shape: bf16[2,8,32], index: 1, kind: input, shape index: {}]   ;;  %s5836_s2 = inlined_call_operand.hbm [shape: bf16[2,8,32], index: 2, kind: input, shape index: {}]   ;;  %s5837_s3 = inlined_call_operand.hbm [shape: bf16[32,32], index: 3, kind: input, shape index: {}]   ;;  %s5838_s4 = inlined_call_operand.hbm [shape: bf16[32,32], index: 4, kind: input, shape index: {}]   ;;  %s5839_s5 = inlined_call_operand.vmem [shape: bf16[32,32], index: 5, kind: input, shape index: {}]   ;;  %s5840_s6 = inlined_call_operand.hbm [shape: bf16[32,32], index: 6, kind: input, shape index: {}]   ;;  %s5841_s7 = inlined_call_operand.vmem [shape: f32[1,32], index: 7, kind: input, shape index: {}]   ;;  %s5842_s8 = inlined_call_operand.vmem [shape: f32[1,32], index: 8, kind: input, shape index: {}]   ;;  %s5843_s9 = inlined_call_operand.hbm [shape: f32[2,256], index: 9, kind: output, shape index: {0}]   ;;  %s5844_s10 = inlined_call_operand.hbm [shape: bf16[2,256], index: 10, kind: output, shape index: {1}]  }
   0x1   :  { %17 = vsyncpa [#allocation12], 0 }
   0x2   :  { %18 = vsyncpa [#allocation15], 0 }
   0x3   :  { %19 = vsyncpa [#allocation18], 0 }
   0x4   :  { %20 = vsyncpa [#allocation10], 0 }
   0x5   :  { %21 = vsyncpa [#allocation21], 0  ;;  %s4992_s13 = smov [#allocation11]   ;;  %s4993_s15 = smov [#allocation14]  }
   0x6   :  { %s39_s14 = sshll.u32 %s4992_s13, 4  ;;  %s63_s16 = sshll.u32 %s4993_s15, 4  ;;  %s40_s14 = int_to_ptr.vmem [resolvable:$true] %s39_s14  ;;  %s5075_s16 = int_to_ptr.vmem [resolvable:$true] %s63_s16 }
   0x7   :  { %s4804_s19 = scalar_lea.hbm %s5835_s1, 128 }
   0x8   :  { %p4805_p0 = scmp.ne.s32.totalorder %s5835_s1, %s4804_s19  ;;  %p4808_p1 = scmp.lt.u32.totalorder %s4804_s19, %s5835_s1 }
   0xa   :  { %p4810_p2 = pnand %p4808_p1, %p4805_p0 }
   0xc   :  { %4813 = shalt.err (!%p4810_p2)
}
   0xd   :  { %s4814_s24 = scalar_lea.vmem %s40_s14, 128  ;;  %p4819_p4 = scmp.lt.s32.totalorder %s40_s14, %s40_s14 }
   0xe   :  { %p4815_p3 = scmp.ne.s32.totalorder %s40_s14, %s4814_s24  ;;  %p4820_p5 = scmp.lt.s32.totalorder %s4814_s24, %s4814_s24 }
  0x10   :  { %p4821_p6 = por %p4820_p5, %p4819_p4 }
  0x12   :  { %p4822_p7 = pnand %p4821_p6, %p4815_p3 }
  0x14   :  { %4825 = shalt.err (!%p4822_p7)
}
  0x15   :  { %s4994_s25 = smov 64   ;;  %s4995_s26 = smov 4  }
  0x16   :  { %45 = dma.hbm_to_vmem [thread:$0]  %s5835_s1, 128, %s40_s14, [#allocation12], %s4994_s25, %s4994_s25, %s4995_s26  }
  0x17   :  { %s4826_s11 = scalar_lea.hbm %s5837_s3, 256 }
  0x18   :  { %p4827_p8 = scmp.ne.s32.totalorder %s5837_s3, %s4826_s11  ;;  %p4830_p9 = scmp.lt.u32.totalorder %s4826_s11, %s5837_s3 }
  0x1a   :  { %p4832_p10 = pnand %p4830_p9, %p4827_p8 }
  0x1c   :  { %4835 = shalt.err (!%p4832_p10)
}
  0x1d   :  { %s4836_s18 = scalar_lea.vmem %s5075_s16, 256  ;;  %p4841_p12 = scmp.lt.s32.totalorder %s5075_s16, %s5075_s16 }
  0x1e   :  { %p4837_p11 = scmp.ne.s32.totalorder %s5075_s16, %s4836_s18  ;;  %p4842_p13 = scmp.lt.s32.totalorder %s4836_s18, %s4836_s18 }
  0x20   :  { %p4843_p0 = por %p4842_p13, %p4841_p12 }
  0x22   :  { %p4844_p1 = pnand %p4843_p0, %p4837_p11 }
  0x24   :  { %4847 = shalt.err (!%p4844_p1)
}
  0x25   :  { %69 = dma.hbm_to_vmem [thread:$0]  %s5837_s3, 256, %s5075_s16, [#allocation15], %s4994_s25, %s4994_s25, %s4995_s26  }
  0x26   :  { %s4996_s19 = smov [#allocation8]   ;;  %s4997_s21 = smov [#allocation13]  }
  0x27   :  { %s27_s20 = sshll.u32 %s4996_s19, 4  ;;  %s51_s22 = sshll.u32 %s4997_s21, 4  ;;  %s28_s20 = int_to_ptr.vmem [resolvable:$true] %s27_s20  ;;  %s5112_s22 = int_to_ptr.vmem [resolvable:$true] %s51_s22 }
  0x28   :  { %s4848_s27 = scalar_lea.hbm %s5834_s0, 128 }
  0x29   :  { %p4849_p2 = scmp.ne.s32.totalorder %s5834_s0, %s4848_s27  ;;  %p4852_p3 = scmp.lt.u32.totalorder %s4848_s27, %s5834_s0 }
  0x2b   :  { %p4854_p4 = pnand %p4852_p3, %p4849_p2 }
  0x2d   :  { %4857 = shalt.err (!%p4854_p4)
}
  0x2e   :  { %s4858_s3 = scalar_lea.vmem %s28_s20, 128  ;;  %p4863_p6 = scmp.lt.s32.totalorder %s28_s20, %s28_s20 }
  0x2f   :  { %p4859_p5 = scmp.ne.s32.totalorder %s28_s20, %s4858_s3  ;;  %p4864_p7 = scmp.lt.s32.totalorder %s4858_s3, %s4858_s3 }
  0x31   :  { %p4865_p8 = por %p4864_p7, %p4863_p6 }
  0x33   :  { %p4866_p9 = pnand %p4865_p8, %p4859_p5 }
  0x35   :  { %4869 = shalt.err (!%p4866_p9)
}
  0x36   :  { %33 = dma.hbm_to_vmem [thread:$0]  %s5834_s0, 128, %s28_s20, [#allocation9], %s4994_s25, %s4994_s25, %s4995_s26  }
  0x37   :  { %s4870_s17 = scalar_lea.hbm %s5836_s2, 128 }
  0x38   :  { %p4871_p10 = scmp.ne.s32.totalorder %s5836_s2, %s4870_s17  ;;  %p4874_p11 = scmp.lt.u32.totalorder %s4870_s17, %s5836_s2 }
  0x3a   :  { %p4876_p12 = pnand %p4874_p11, %p4871_p10 }
  0x3c   :  { %4879 = shalt.err (!%p4876_p12)
}
  0x3d   :  { %s4880_s21 = scalar_lea.vmem %s5112_s22, 128  ;;  %p4885_p0 = scmp.lt.s32.totalorder %s5112_s22, %s5112_s22 }
  0x3e   :  { %p4881_p13 = scmp.ne.s32.totalorder %s5112_s22, %s4880_s21  ;;  %p4886_p1 = scmp.lt.s32.totalorder %s4880_s21, %s4880_s21 }
  0x40   :  { %p4887_p2 = por %p4886_p1, %p4885_p0 }
  0x42   :  { %p4888_p3 = pnand %p4887_p2, %p4881_p13 }
  0x44   :  { %4891 = shalt.err (!%p4888_p3)
}
  0x45   :  { %57 = dma.hbm_to_vmem [thread:$0]  %s5836_s2, 128, %s5112_s22, [#allocation12], %s4994_s25, %s4994_s25, %s4995_s26  }
  0x46   :  { %s4998_s23 = smov [#allocation16]   ;;  %s4999_s27 = smov [#allocation17]  }
  0x47   :  { %s75_s24 = sshll.u32 %s4998_s23, 4  ;;  %s89_s28 = sshll.u32 %s4999_s27, 4  ;;  %s76_s24 = int_to_ptr.vmem [resolvable:$true] %s75_s24  ;;  %s5149_s28 = int_to_ptr.vmem [resolvable:$true] %s89_s28 }
  0x48   :  { %s4892_s11 = scalar_lea.hbm %s5838_s4, 256 }
  0x49   :  { %p4893_p4 = scmp.ne.s32.totalorder %s5838_s4, %s4892_s11  ;;  %p4896_p5 = scmp.lt.u32.totalorder %s4892_s11, %s5838_s4 }
  0x4b   :  { %p4898_p6 = pnand %p4896_p5, %p4893_p4 }
  0x4d   :  { %4901 = shalt.err (!%p4898_p6)
}
  0x4e   :  { %s4902_s2 = scalar_lea.vmem %s76_s24, 256  ;;  %p4907_p8 = scmp.lt.s32.totalorder %s76_s24, %s76_s24 }
  0x4f   :  { %p4903_p7 = scmp.ne.s32.totalorder %s76_s24, %s4902_s2  ;;  %p4908_p9 = scmp.lt.s32.totalorder %s4902_s2, %s4902_s2 }
  0x51   :  { %p4909_p10 = por %p4908_p9, %p4907_p8 }
  0x53   :  { %p4910_p11 = pnand %p4909_p10, %p4903_p7 }
  0x55   :  { %4913 = shalt.err (!%p4910_p11)
}
  0x56   :  { %81 = dma.hbm_to_vmem [thread:$0]  %s5838_s4, 256, %s76_s24, [#allocation15], %s4994_s25, %s4994_s25, %s4995_s26  }
  0x57   :  { %s4914_s1 = scalar_lea.hbm %s5840_s6, 256 }
  0x58   :  { %p4915_p12 = scmp.ne.s32.totalorder %s5840_s6, %s4914_s1  ;;  %p4918_p13 = scmp.lt.u32.totalorder %s4914_s1, %s5840_s6 }
  0x5a   :  { %p4920_p0 = pnand %p4918_p13, %p4915_p12 }
  0x5c   :  { %4923 = shalt.err (!%p4920_p0)
}
  0x5d   :  { %s4924_s20 = scalar_lea.vmem %s5149_s28, 256  ;;  %p4929_p2 = scmp.lt.s32.totalorder %s5149_s28, %s5149_s28 }
  0x5e   :  { %p4925_p1 = scmp.ne.s32.totalorder %s5149_s28, %s4924_s20  ;;  %p4930_p3 = scmp.lt.s32.totalorder %s4924_s20, %s4924_s20 }
  0x60   :  { %p4931_p4 = por %p4930_p3, %p4929_p2 }
  0x62   :  { %p4932_p5 = pnand %p4931_p4, %p4925_p1 }
  0x64   :  { %4935 = shalt.err (!%p4932_p5)
}
  0x65   :  { %95 = dma.hbm_to_vmem [thread:$0]  %s5840_s6, 256, %s5149_s28, [#allocation18], %s4994_s25, %s4994_s25, %s4995_s26  }
  0x66   :  { %4980 = dma.done.wait [#allocation9], 128  }
  0x67   :  { %4981 = vsyncadd [#allocation9], 4294967168 }
  0x68   :  { %4982 = dma.done.wait [#allocation12], 256  }
  0x69   :  { %4983 = vsyncadd [#allocation12], 4294967040 }
  0x6a   :  { %4984 = dma.done.wait [#allocation15], 512  }
  0x6b   :  { %4985 = vsyncadd [#allocation15], 4294966784 }
  0x6c   :  { %4986 = dma.done.wait [#allocation18], 256  }
  0x6d   :  { %4987 = vsyncadd [#allocation18], 4294967040  ;;  %v5000_v0 = vmov 0.0   ;;  %vm5001_vm0 = vmmov 0   ;;  %v4750_v1 = vld [vmem:[#allocation16] sm:$0xff]   ;;  %v4751_v2 = vld [vmem:[#allocation16 + $0x8] sm:$0xff]  }
  0x6e   :  { %4602 = vmatprep.subr.bf16.mxu1 %v5000_v0  ;;  %4594 = vmatprep.subr.bf16.mxu0 %v5000_v0  ;;  %v4752_v3 = vld [vmem:[#allocation14] sm:$0xff]   ;;  %v4753_v4 = vld [vmem:[#allocation11] sm:$0xff]   ;;  %v4754_v5 = vld [vmem:[#allocation14 + $0x8] sm:$0xff]   ;;  %vm146_vm1 = vcmask 261120   ;;  %vm345_vm2 = vcmask 64512   ;;  %vm465_vm3 = vcmask 1043456  }
  0x6f   :  { %4606 = vmatprep.mubr.msk.bf16.mxu1 %vm5001_vm0, %v5000_v0  ;;  %4598 = vmatprep.mubr.msk.bf16.mxu0 %vm5001_vm0, %v5000_v0  ;;  %v5194_v6 = vld [vmem:[#allocation8] sm:$0xff]   ;;  %v4756_v7 = vld [vmem:[%s5839_s5] sm:$0xff]   ;;  %v4760_v9 = vld [vmem:[#allocation13] sm:$0xff]   ;;  %v5003_v63 = vmov 1966171168   ;;  %vm557_vm4 = vcmask 60416  }
  0x70   :  { %4603 = vmatpush3.bf16.msra.mxu1 %v4750_v1  ;;  %4595 = vmatpush3.bf16.msra.mxu0 %v4752_v3  ;;  %v4757_v8 = vld [vmem:[%s5839_s5 + $0x8] sm:$0xff]   ;;  %s5002_s5 = smov 120   ;;  %v572_v1 = vunpack.c.l.s4 %v5003_v63  ;;  %vm623_vm5 = vcmask 1041409   ;;  %vm641_vm6 = vcmask 57344   ;;  %s5005_s28 = smov 112   ;;  %vm1490_vm7 = vcmask 130112  }
  0x71   :  { %4604 = vmatprep.subr.bf16.mxu1 %v5000_v0  ;;  %4596 = vmatprep.subr.bf16.mxu0 %v5000_v0  ;;  %s5006_s29 = smov 104   ;;  %s5007_s30 = smov 8   ;;  %vm2425_vm8 = vcmask 195712   ;;  %vm3350_vm9 = vcmask 261312   ;;  %vm725_vm10 = vcmask 122944   ;;  %vm811_vm11 = vcmask 188544  }
  0x72   :  { %s5008_s11 = smov 16   ;;  %s5009_s3 = smov 24   ;;  %vm897_vm12 = vcmask 254144   ;;  %vm983_vm13 = vcmask 319744   ;;  %vm1069_vm14 = vcmask 385344   ;;  %vm1157_vm15 = vcmask 450944  }
  0x73   :  { %s5010_s16 = smov 32   ;;  %s5011_s12 = smov 40  }
  0x74   :  { %4605 = vmatpush3.bf16.msra.mxu1 %v4751_v2  ;;  %4597 = vmatpush3.bf16.msra.mxu0 %v4754_v5  ;;  %v574_v2 = vlaneseq  ;;  %v5004_v5 = vmov 1935823168   ;;  %s5012_s13 = smov 48   ;;  %s5013_s2 = smov 56  }
  0x75   :  { %4618 = vmatprep.subr.bf16.mxu1 %v5000_v0  ;;  %4610 = vmatprep.subr.bf16.mxu0 %v5000_v0  ;;  %s5014_s22 = smov 72   ;;  %s5015_s15 = smov 80  }
  0x76   :  { %s5016_s17 = smov 88   ;;  %s5017_s18 = smov 96  }
  0x77   :  { %4607 = vmatmul.mubr.msk.bf16.vlgmr.msra.gmra.mrb[0].mxu1 %vm146_vm1, %v4753_v4  ;;  %4599 = vmatmul.mubr.msk.bf16.vlgmr.msra.gmra.mrb[0].mxu0 %vm146_vm1, %v5194_v6 }
  0x78   :  { %4620 = vmatprep.mubr.msk.bf16.mxu1 %vm5001_vm0, %v5000_v0  ;;  %4614 = vmatprep.mubr.msk.bf16.mxu0 %vm5001_vm0, %v5000_v0 }
  0x79   :  { %4611 = vmatpush3.bf16.msra.mxu0 %v4756_v7  ;;  %v593_v7 = vunpack.c.l.s4 %v5004_v5 }
  0x7a   :  { %4612 = vmatprep.subr.bf16.mxu0 %v5000_v0 }
  0x7d   :  { %4613 = vmatpush3.bf16.msra.mxu0 %v4757_v8 }
  0x7e   :  { %4624 = vmatprep.subr.bf16.mxu0 %v5000_v0 }
  0x80   :  { %4615 = vmatmul.mubr.msk.bf16.vlgmr.msra.gmra.mrb[4].mxu0 %vm146_vm1, %v4760_v9 }
  0x81   :  { %4626 = vmatprep.mubr.msk.bf16.mxu0 %vm5001_vm0, %v5000_v0 }
 0x14a   :  { %v251_v10 = vpop.f32.mrb[0].mxu1  ;;  %v184_v13 = vpop.f32.mrb[0].mxu0 }
 0x14b   :  { %v4608_v11 = vpop.f32.mrb[1].mxu1  ;;  %v4600_v16 = vpop.f32.mrb[1].mxu0 }
 0x14c   :  { %v254_v12 = vpop.f32.mrb[2].mxu1  ;;  %v187_v17 = vpop.f32.mrb[2].mxu0  ;;  %v573_v11 = vunpack.c.0.s8 %v572_v1 }
 0x14d   :  { %v258_v14 = vpack.c.bf16 %v254_v12, %v251_v10  ;;  %v4609_v15 = vpop.f32.mrb[3].mxu1  ;;  %v191_v18 = vpack.c.bf16 %v187_v17, %v184_v13  ;;  %v4601_v19 = vpop.f32.mrb[3].mxu0  ;;  %v575_v12 = vshrl.u32 %v574_v2, 7 }
 0x14f   :  { %259 = vst.msk [vmem:[#allocation3] sm:$0xff] %vm146_vm1, %v258_v14  ;;  %192 = vst.msk [vmem:[#allocation2] sm:$0xff] %vm146_vm1, %v191_v18  ;;  %v594_v14 = vunpack.c.0.s8 %v593_v7  ;;  %v5272_v16 = vsub.s32 %v573_v11, %v575_v12 }
 0x151   :  { %v5277_v18 = vsub.s32 %v594_v14, %v575_v12 }
 0x153   :  { %v318_v28 = vpop.f32.mrb[4].mxu0 }
 0x154   :  { %v4616_v29 = vpop.f32.mrb[5].mxu0 }
 0x155   :  { %v321_v30 = vpop.f32.mrb[6].mxu0 }
 0x156   :  { %v1251_v20 = vld [vmem:[#allocation3] sm:$0xff]  ;;  %v327_v25 = vld [vmem:[#allocation2] sm:$0xff]  ;;  %v325_v31 = vpack.c.bf16 %v321_v30, %v318_v28  ;;  %v4617_v32 = vpop.f32.mrb[7].mxu0 }
 0x157   :  { %v5218_v21 = vcombine.high %v1251_v20, %v1251_v20  ;;  %v5220_v22 = vcombine.low %v1251_v20, %v1251_v20  ;;  %v5230_v26 = vcombine.low %v327_v25, %v327_v25  ;;  %v5232_v27 = vcombine.high %v327_v25, %v327_v25 }
 0x158   :  { %326 = vst.msk [vmem:[#allocation4] sm:$0xff] %vm146_vm1, %v325_v31 }
 0x159   :  { %1315 = vrot.lane.b32.xlu1 %v5218_v21, %s5002_s5  ;;  %v350_v23 = vsel %vm345_vm2, %v5220_v22, 0  ;;  %v396_v24 = vsel %vm345_vm2, %v5218_v21, 0 }
 0x15a   :  { %4619 = vmatpush3.bf16.xpose.msra.mxu1 %v350_v23  ;;  %4625 = vmatpush3.bf16.xpose.msra.mxu0 %v396_v24 }
 0x15b   :  { %4630 = vmatprep.subr.bf16.mxu1 %v5000_v0  ;;  %4636 = vmatprep.subr.bf16.mxu0 %v5000_v0 }
 0x15f   :  { %v339_v33 = vld [vmem:[#allocation4] sm:$0xff] }
 0x160   :  { %v5243_v34 = vcombine.low %v339_v33, %v339_v33  ;;  %v5245_v35 = vcombine.high %v339_v33, %v339_v33 }
 0x161   :  { %4621 = vmatmul.mubr.msk.bf16.vlgmr.msra.gmra.mrb[4].mxu1 %vm345_vm2, %v5230_v26  ;;  %4627 = vmatmul.mubr.msk.bf16.vlgmr.msra.gmra.mrb[8].mxu0 %vm345_vm2, %v5232_v27 }
 0x162   :  { %4632 = vmatprep.mubr.msk.bf16.mxu1 %vm5001_vm0, %v5000_v0  ;;  %4638 = vmatprep.mubr.msk.bf16.mxu0 %vm5001_vm0, %v5000_v0  ;;  %v467_v36 = vsel %vm465_vm3, %v5243_v34, 0  ;;  %v513_v37 = vsel %vm465_vm3, %v5245_v35, 0 }
 0x163   :  { %4631 = vmatpush3.bf16.msra.mxu1 %v467_v36  ;;  %4637 = vmatpush3.bf16.msra.mxu0 %v513_v37 }
 0x164   :  { %4642 = vmatprep.subr.bf16.mxu1 %v5000_v0  ;;  %4648 = vmatprep.subr.bf16.mxu0 %v5000_v0 }
 0x1cb   :  { %v1316_v58 = vpop.permute.xlu1 %1315 }
 0x1cc   :  { %v1321_v15 = vsel %vm345_vm2, %v1316_v58, 0 }
 0x234   :  { %v386_v38 = vpop.f32.mrb[4].mxu1  ;;  %v432_v39 = vpop.f32.mrb[8].mxu0 }
 0x235   :  { %v4622_v40 = vpop.f32.mrb[5].mxu1  ;;  %v4628_v41 = vpop.f32.mrb[9].mxu0  ;;  %v438_v42 = vsel %vm345_vm2, %v386_v38, -inf  ;;  %v441_v47 = vsel %vm345_vm2, %v432_v39, -inf }
 0x236   :  { %439 = vmax.xlane.f32.xlu0 %v438_v42  ;;  %v389_v43 = vpop.f32.mrb[6].mxu1  ;;  %v435_v44 = vpop.f32.mrb[10].mxu0 }
 0x237   :  { %v4623_v45 = vpop.f32.mrb[7].mxu1  ;;  %v4629_v46 = vpop.f32.mrb[11].mxu0 }
 0x23a   :  { %442 = vmax.xlane.f32.xlu0 %v441_v47 }
 0x250   :  { %1263 = vrot.lane.b32.xlu0 %v5220_v22, %s5002_s5 }
 0x2c3   :  { %v440_v48 = vpop.xlane.xlu0 %439 }
 0x2c4   :  { %v444_v49 = vsub.f32 %v386_v38, %v440_v48 }
 0x2c6   :  { %v446_v50 = vmul.f32 1.442695, %v444_v49 }
 0x2c7   :  { %v443_v51 = vpop.xlane.xlu0 %442 }
 0x2c8   :  { %4768 = vpow2.f32 %v446_v50  ;;  %v445_v52 = vsub.f32 %v432_v39, %v443_v51 }
 0x2ca   :  { %v448_v53 = vmul.f32 1.442695, %v445_v52 }
 0x2cb   :  { %v1264_v3 = vpop.permute.xlu0 %1263 }
 0x2cc   :  { %4770 = vpow2.f32 %v448_v53  ;;  %v1269_v9 = vsel %vm345_vm2, %v1264_v3, 0 }
 0x2d2   :  { %v4769_v54 = vpop.eup %4768 }
 0x2d3   :  { %v450_v55 = vsel %vm345_vm2, %v4769_v54, 0.0 }
 0x2d4   :  { %451 = vadd.xlane.f32.xlu1 %v450_v55 }
 0x2d6   :  { %v4771_v56 = vpop.eup %4770 }
 0x2d7   :  { %v453_v57 = vsel %vm345_vm2, %v4771_v56, 0.0 }
 0x2d8   :  { %454 = vadd.xlane.f32.xlu1 %v453_v57 }
 0x2e9   :  { %1260 = vrot.lane.b32.xlu1 %v5230_v26, %s5002_s5 }
 0x2ed   :  { %1312 = vrot.lane.b32.xlu1 %v5232_v27, %s5002_s5 }
 0x361   :  { %v452_v59 = vpop.xlane.xlu1 %451 }
 0x362   :  { %4772 = vrcp.f32 %v452_v59 }
 0x365   :  { %v455_v60 = vpop.xlane.xlu1 %454 }
 0x366   :  { %4774 = vrcp.f32 %v455_v60 }
 0x369   :  { %v1261_v17 = vpop.permute.xlu1 %1260 }
 0x36c   :  { %v4773_v61 = vpop.eup %4772 }
 0x36d   :  { %v458_v62 = vmul.f32 %v4773_v61, %v4769_v54  ;;  %v1313_v24 = vpop.permute.xlu1 %1312 }
 0x36f   :  { %v460_v4 = vpack.c.bf16 %v458_v62, %v458_v62 }
 0x370   :  { %v4775_v8 = vpop.eup %4774 }
 0x371   :  { %v459_v10 = vmul.f32 %v4775_v8, %v4771_v56  ;;  %4633 = vmatmul.mubr.msk.bf16.vlgmr.msra.gmra.mrb[8].mxu1 %vm345_vm2, %v460_v4  ;;  %558 = vst.msk [vmem:[#allocation6] sm:$0xf] %vm557_vm4, %v460_v4 }
 0x372   :  { %4643 = vmatpush3.bf16.xpose.msra.mxu1 %v1269_v9  ;;  %4644 = vmatprep.mubr.msk.bf16.mxu1 %vm5001_vm0, %v5000_v0 }
 0x373   :  { %v461_v13 = vpack.c.bf16 %v459_v10, %v459_v10  ;;  %4654 = vmatprep.subr.bf16.mxu1 %v5000_v0 }
 0x375   :  { %4639 = vmatmul.mubr.msk.bf16.vlgmr.msra.gmra.mrb[12].mxu0 %vm345_vm2, %v461_v13  ;;  %559 = vst.msk [vmem:[#allocation6 + $0x4] sm:$0xf] %vm557_vm4, %v461_v13 }
 0x376   :  { %4649 = vmatpush3.bf16.xpose.msra.mxu0 %v1321_v15  ;;  %4650 = vmatprep.mubr.msk.bf16.mxu0 %vm5001_vm0, %v5000_v0 }
 0x377   :  { %4660 = vmatprep.subr.bf16.mxu0 %v5000_v0 }
 0x378   :  { %v4435_v19 = vld.sshfl [vmem:[#allocation6] sm:$0x1 pattern:$0x75316420] }
 0x379   :  { %4645 = vmatmul.mubr.msk.bf16.vlgmr.msra.gmra.mrb[12].mxu1 %vm345_vm2, %v1261_v17  ;;  %v660_v20 = vrot.slane %v4435_v19, %v5272_v16 }
 0x37a   :  { %4656 = vmatprep.mubr.msk.bf16.mxu1 %vm5001_vm0, %v5000_v0 }
 0x37b   :  { %v681_v23 = vrot.slane %v660_v20, %v5277_v18 }
 0x37c   :  { %v4436_v25 = vld.sshfl [vmem:[#allocation6 + $0x4] sm:$0x1 pattern:$0x75316420] }
 0x37d   :  { %4651 = vmatmul.mubr.msk.bf16.vlgmr.msra.gmra.mrb[16].mxu0 %vm345_vm2, %v1313_v24  ;;  %v674_v28 = vrot.slane %v4436_v25, %v5272_v16  ;;  %v688_v29 = vrot.slane %v681_v23, %v5277_v18  ;;  %v5319_v23 = vld.sshfl [vmem:[#allocation6] sm:$0x10 pattern:$0x75316420] }
 0x37e   :  { %4662 = vmatprep.mubr.msk.bf16.mxu0 %vm5001_vm0, %v5000_v0  ;;  %v5321_v24 = vld.sshfl [vmem:[#allocation6] sm:$0x2 pattern:$0x75316420] }
 0x37f   :  { %v695_v30 = vrot.slane %v674_v28, %v5277_v18  ;;  %v703_v31 = vunpack.c.l.b16 %v688_v29  ;;  %v5323_v29 = vld.sshfl [vmem:[#allocation6] sm:$0x20 pattern:$0x75316420] }
 0x381   :  { %v702_v32 = vrot.slane %v695_v30, %v5277_v18  ;;  %v705_v36 = vrot.slane %v703_v31, 1 }
 0x383   :  { %v704_v33 = vunpack.c.l.b16 %v702_v32 }
 0x385   :  { %v5292_v37 = vsel %vm623_vm5, %v704_v33, %v705_v36  ;;  %v622_v38 = vrot.slane %v704_v33, 7  ;;  %v5331_v33 = vld.sshfl [vmem:[#allocation6 + $0x4] sm:$0x2 pattern:$0x75316420] }
 0x387   :  { %v624_v39 = vsel %vm623_vm5, %v622_v38, %v703_v31  ;;  %v5327_v31 = vld.sshfl [vmem:[#allocation6 + $0x4] sm:$0x10 pattern:$0x75316420] }
 0x388   :  { %v625_v40 = vpack.c.b16 %v624_v39, %v624_v39  ;;  %v5334_v39 = vld.sshfl [vmem:[#allocation6 + $0x4] sm:$0x20 pattern:$0x75316420] }
 0x38a   :  { %v632_v41 = vrot.slane %v625_v40, %v5272_v16 }
 0x38c   :  { %v639_v42 = vrot.slane %v632_v41, %v5272_v16 }
 0x38e   :  { %642 = vst.msk [vmem:[#allocation20] sm:$0x1] %vm641_vm6, %v639_v42 }
 0x444   :  { %v503_v43 = vpop.f32.mrb[8].mxu1 }
 0x445   :  { %v4634_v44 = vpop.f32.mrb[9].mxu1 }
 0x446   :  { %v506_v45 = vpop.f32.mrb[10].mxu1 }
 0x447   :  { %v4635_v46 = vpop.f32.mrb[11].mxu1 }
 0x448   :  { %v549_v47 = vpop.f32.mrb[12].mxu0 }
 0x449   :  { %v555_v48 = vpack.c.bf16 %v549_v47, %v503_v43  ;;  %v4640_v49 = vpop.f32.mrb[13].mxu0 }
 0x44a   :  { %v552_v50 = vpop.f32.mrb[14].mxu0 }
 0x44b   :  { %556 = vst.msk [vmem:[#allocation5] sm:$0xff] %vm345_vm2, %v555_v48  ;;  %v4641_v51 = vpop.f32.mrb[15].mxu0 }
 0x44c   :  { %v1305_v52 = vpop.f32.mrb[12].mxu1 }
 0x44d   :  { %v4646_v53 = vpop.f32.mrb[13].mxu1  ;;  %v1363_v54 = vsel %vm345_vm2, %v1305_v52, -inf }
 0x44e   :  { %1364 = vmax.xlane.f32.xlu0 %v1363_v54  ;;  %v1308_v55 = vpop.f32.mrb[14].mxu1 }
 0x44f   :  { %v4647_v56 = vpop.f32.mrb[15].mxu1 }
 0x450   :  { %v1357_v57 = vpop.f32.mrb[16].mxu0 }
 0x451   :  { %v4652_v58 = vpop.f32.mrb[17].mxu0  ;;  %v1366_v59 = vsel %vm345_vm2, %v1357_v57, -inf }
 0x452   :  { %1367 = vmax.xlane.f32.xlu1 %v1366_v59  ;;  %v1360_v60 = vpop.f32.mrb[18].mxu0 }
 0x453   :  { %v4653_v61 = vpop.f32.mrb[19].mxu0 }
 0x463   :  { %1437 = vrot.lane.b32.xlu1 %v5245_v35, %s5002_s5 }
 0x467   :  { %2198 = vrot.lane.b32.xlu1 %v5220_v22, %s5005_s28 }
 0x46b   :  { %2250 = vrot.lane.b32.xlu1 %v5218_v21, %s5005_s28 }
 0x46f   :  { %2247 = vrot.lane.b32.xlu1 %v5232_v27, %s5005_s28 }
 0x4db   :  { %v1365_v62 = vpop.xlane.xlu0 %1364 }
 0x4dc   :  { %v1369_v63 = vsub.f32 %v1305_v52, %v1365_v62 }
 0x4de   :  { %v1371_v1 = vmul.f32 1.442695, %v1369_v63 }
 0x4df   :  { %v1368_v2 = vpop.xlane.xlu1 %1367 }
 0x4e0   :  { %4776 = vpow2.f32 %v1371_v1  ;;  %v1370_v3 = vsub.f32 %v1357_v57, %v1368_v2 }
 0x4e2   :  { %v1373_v4 = vmul.f32 1.442695, %v1370_v3 }
 0x4e3   :  { %v1438_v5 = vpop.permute.xlu1 %1437 }
 0x4e4   :  { %4778 = vpow2.f32 %v1373_v4  ;;  %v1443_v7 = vsel %vm465_vm3, %v1438_v5, 0 }
 0x4e5   :  { %4661 = vmatpush3.bf16.msra.mxu0 %v1443_v7 }
 0x4e6   :  { %4672 = vmatprep.subr.bf16.mxu0 %v5000_v0 }
 0x4e7   :  { %v2199_v19 = vpop.permute.xlu1 %2198 }
 0x4e8   :  { %v2204_v36 = vsel %vm345_vm2, %v2199_v19, 0 }
 0x4ea   :  { %v4777_v8 = vpop.eup %4776 }
 0x4eb   :  { %v1375_v9 = vsel %vm345_vm2, %v4777_v8, 0.0  ;;  %v2251_v32 = vpop.permute.xlu1 %2250 }
 0x4ec   :  { %1376 = vadd.xlane.f32.xlu0 %v1375_v9  ;;  %v2256_v40 = vsel %vm345_vm2, %v2251_v32, 0 }
 0x4ee   :  { %v4779_v10 = vpop.eup %4778 }
 0x4ef   :  { %v1378_v11 = vsel %vm345_vm2, %v4779_v10, 0.0  ;;  %v2248_v42 = vpop.permute.xlu1 %2247 }
 0x4f0   :  { %1379 = vadd.xlane.f32.xlu0 %v1378_v11 }
 0x506   :  { %1388 = vrot.lane.b32.xlu0 %v5243_v34, %s5002_s5 }
 0x50a   :  { %2195 = vrot.lane.b32.xlu0 %v5230_v26, %s5005_s28 }
 0x579   :  { %v1377_v12 = vpop.xlane.xlu0 %1376 }
 0x57a   :  { %4780 = vrcp.f32 %v1377_v12 }
 0x57d   :  { %v1380_v13 = vpop.xlane.xlu0 %1379 }
 0x57e   :  { %4782 = vrcp.f32 %v1380_v13 }
 0x581   :  { %v1389_v14 = vpop.permute.xlu0 %1388 }
 0x582   :  { %v1394_v15 = vsel %vm465_vm3, %v1389_v14, 0 }
 0x583   :  { %4655 = vmatpush3.bf16.msra.mxu1 %v1394_v15 }
 0x584   :  { %v4781_v17 = vpop.eup %4780  ;;  %4666 = vmatprep.subr.bf16.mxu1 %v5000_v0 }
 0x585   :  { %v1383_v20 = vmul.f32 %v4781_v17, %v4777_v8  ;;  %v2196_v41 = vpop.permute.xlu0 %2195 }
 0x587   :  { %v1385_v25 = vpack.c.bf16 %v1383_v20, %v1383_v20 }
 0x588   :  { %v4783_v28 = vpop.eup %4782 }
 0x589   :  { %v1384_v30 = vmul.f32 %v4783_v28, %v4779_v10  ;;  %4657 = vmatmul.mubr.msk.bf16.vlgmr.msra.gmra.mrb[16].mxu1 %vm345_vm2, %v1385_v25  ;;  %1492 = vst.msk [vmem:[#allocation6] sm:$0xf] %vm557_vm4, %v1385_v25 }
 0x58a   :  { %4668 = vmatprep.mubr.msk.bf16.mxu1 %vm5001_vm0, %v5000_v0 }
 0x58b   :  { %v1386_v38 = vpack.c.bf16 %v1384_v30, %v1384_v30 }
 0x58c   :  { %4667 = vmatpush3.bf16.xpose.msra.mxu1 %v2204_v36 }
 0x58d   :  { %4663 = vmatmul.mubr.msk.bf16.vlgmr.msra.gmra.mrb[20].mxu0 %vm345_vm2, %v1386_v38  ;;  %4678 = vmatprep.subr.bf16.mxu1 %v5000_v0  ;;  %1493 = vst.msk [vmem:[#allocation6 + $0x4] sm:$0xf] %vm557_vm4, %v1386_v38 }
 0x58e   :  { %4673 = vmatpush3.bf16.xpose.msra.mxu0 %v2256_v40  ;;  %4674 = vmatprep.mubr.msk.bf16.mxu0 %vm5001_vm0, %v5000_v0 }
 0x58f   :  { %4684 = vmatprep.subr.bf16.mxu0 %v5000_v0 }
 0x590   :  { %v5375_v17 = vld.sshfl [vmem:[#allocation6] sm:$0x1 pattern:$0x75316420] }
 0x591   :  { %v5377_v19 = vld.sshfl [vmem:[#allocation6] sm:$0x10 pattern:$0x75316420] }
 0x592   :  { %v5379_v25 = vld.sshfl [vmem:[#allocation6] sm:$0x2 pattern:$0x75316420] }
 0x593   :  { %4669 = vmatmul.mubr.msk.bf16.vlgmr.msra.gmra.mrb[20].mxu1 %vm345_vm2, %v2196_v41  ;;  %v5381_v28 = vld.sshfl [vmem:[#allocation6] sm:$0x20 pattern:$0x75316420] }
 0x594   :  { %4680 = vmatprep.mubr.msk.bf16.mxu1 %vm5001_vm0, %v5000_v0  ;;  %v5385_v36 = vld.sshfl [vmem:[#allocation6 + $0x4] sm:$0x1 pattern:$0x75316420] }
 0x595   :  { %4675 = vmatmul.mubr.msk.bf16.vlgmr.msra.gmra.mrb[24].mxu0 %vm345_vm2, %v2248_v42  ;;  %v5387_v38 = vld.sshfl [vmem:[#allocation6 + $0x4] sm:$0x10 pattern:$0x75316420] }
 0x596   :  { %4686 = vmatprep.mubr.msk.bf16.mxu0 %vm5001_vm0, %v5000_v0  ;;  %v5392_v41 = vld.sshfl [vmem:[#allocation6 + $0x4] sm:$0x2 pattern:$0x75316420] }
 0x65c   :  { %v5349_v43 = vpop.f32.mrb[16].mxu1 }
 0x65d   :  { %v4658_v44 = vpop.f32.mrb[17].mxu1 }
 0x65e   :  { %v1433_v45 = vpop.f32.mrb[18].mxu1  ;;  %v5394_v44 = vld.sshfl [vmem:[#allocation6 + $0x4] sm:$0x20 pattern:$0x75316420] }
 0x65f   :  { %v4659_v46 = vpop.f32.mrb[19].mxu1 }
 0x660   :  { %v5351_v47 = vpop.f32.mrb[20].mxu0 }
 0x661   :  { %v1485_v48 = vpack.c.bf16 %v5351_v47, %v5349_v43  ;;  %v4664_v49 = vpop.f32.mrb[21].mxu0 }
 0x662   :  { %v1482_v50 = vpop.f32.mrb[22].mxu0 }
 0x663   :  { %v4665_v51 = vpop.f32.mrb[23].mxu0 }
 0x666   :  { %v2240_v52 = vpop.f32.mrb[20].mxu1 }
 0x667   :  { %v4670_v53 = vpop.f32.mrb[21].mxu1  ;;  %v2298_v54 = vsel %vm345_vm2, %v2240_v52, -inf }
 0x668   :  { %2299 = vmax.xlane.f32.xlu0 %v2298_v54  ;;  %v2243_v55 = vpop.f32.mrb[22].mxu1  ;;  %v2292_v56 = vpop.f32.mrb[24].mxu0 }
 0x669   :  { %v4671_v57 = vpop.f32.mrb[23].mxu1  ;;  %v4676_v58 = vpop.f32.mrb[25].mxu0  ;;  %v2301_v59 = vsel %vm345_vm2, %v2292_v56, -inf }
 0x66a   :  { %2302 = vmax.xlane.f32.xlu1 %v2301_v59  ;;  %v2295_v60 = vpop.f32.mrb[26].mxu0 }
 0x66b   :  { %v4677_v61 = vpop.f32.mrb[27].mxu0 }
 0x67b   :  { %2372 = vrot.lane.b32.xlu1 %v5245_v35, %s5005_s28 }
 0x67f   :  { %3123 = vrot.lane.b32.xlu1 %v5220_v22, %s5006_s29 }
 0x683   :  { %3175 = vrot.lane.b32.xlu1 %v5218_v21, %s5006_s29 }
 0x687   :  { %3172 = vrot.lane.b32.xlu1 %v5232_v27, %s5006_s29 }
 0x6f5   :  { %v2300_v62 = vpop.xlane.xlu0 %2299 }
 0x6f6   :  { %v2304_v63 = vsub.f32 %v2240_v52, %v2300_v62 }
 0x6f7   :  { %v2303_v1 = vpop.xlane.xlu1 %2302 }
 0x6f8   :  { %v2306_v2 = vmul.f32 1.442695, %v2304_v63  ;;  %v2305_v3 = vsub.f32 %v2292_v56, %v2303_v1 }
 0x6fa   :  { %4784 = vpow2.f32 %v2306_v2  ;;  %v2308_v4 = vmul.f32 1.442695, %v2305_v3 }
 0x6fb   :  { %v2373_v5 = vpop.permute.xlu1 %2372 }
 0x6fc   :  { %4786 = vpow2.f32 %v2308_v4  ;;  %v2378_v7 = vsel %vm465_vm3, %v2373_v5, 0 }
 0x6fd   :  { %4685 = vmatpush3.bf16.msra.mxu0 %v2378_v7 }
 0x6fe   :  { %4696 = vmatprep.subr.bf16.mxu0 %v5000_v0 }
 0x6ff   :  { %v3124_v14 = vpop.permute.xlu1 %3123 }
 0x700   :  { %v3129_v40 = vsel %vm345_vm2, %v3124_v14, 0 }
 0x703   :  { %v3176_v32 = vpop.permute.xlu1 %3175 }
 0x704   :  { %v4785_v22 = vpop.eup %4784  ;;  %v3181_v45 = vsel %vm345_vm2, %v3176_v32, 0 }
 0x705   :  { %v2310_v21 = vsel %vm345_vm2, %v4785_v22, 0.0 }
 0x706   :  { %v4787_v8 = vpop.eup %4786  ;;  %2311 = vadd.xlane.f32.xlu0 %v2310_v21 }
 0x707   :  { %v2313_v27 = vsel %vm345_vm2, %v4787_v8, 0.0  ;;  %v3173_v54 = vpop.permute.xlu1 %3172 }
 0x70a   :  { %2314 = vadd.xlane.f32.xlu0 %v2313_v27 }
 0x720   :  { %2323 = vrot.lane.b32.xlu0 %v5243_v34, %s5005_s28 }
 0x724   :  { %3120 = vrot.lane.b32.xlu0 %v5230_v26, %s5006_s29 }
 0x793   :  { %v2312_v9 = vpop.xlane.xlu0 %2311 }
 0x794   :  { %4788 = vrcp.f32 %v2312_v9 }
 0x797   :  { %v2315_v10 = vpop.xlane.xlu0 %2314 }
 0x798   :  { %4790 = vrcp.f32 %v2315_v10 }
 0x79b   :  { %v2324_v11 = vpop.permute.xlu0 %2323 }
 0x79c   :  { %v2329_v12 = vsel %vm465_vm3, %v2324_v11, 0 }
 0x79d   :  { %4679 = vmatpush3.bf16.msra.mxu1 %v2329_v12 }
 0x79e   :  { %v4789_v13 = vpop.eup %4788  ;;  %4690 = vmatprep.subr.bf16.mxu1 %v5000_v0 }
 0x79f   :  { %v2318_v15 = vmul.f32 %v4789_v13, %v4785_v22  ;;  %v3121_v51 = vpop.permute.xlu0 %3120 }
 0x7a1   :  { %v2320_v20 = vpack.c.bf16 %v2318_v15, %v2318_v15 }
 0x7a2   :  { %v4791_v26 = vpop.eup %4790 }
 0x7a3   :  { %v2319_v30 = vmul.f32 %v4791_v26, %v4787_v8  ;;  %4681 = vmatmul.mubr.msk.bf16.vlgmr.msra.gmra.mrb[24].mxu1 %vm345_vm2, %v2320_v20  ;;  %2427 = vst.msk [vmem:[#allocation6] sm:$0xf] %vm557_vm4, %v2320_v20 }
 0x7a4   :  { %4692 = vmatprep.mubr.msk.bf16.mxu1 %vm5001_vm0, %v5000_v0 }
 0x7a5   :  { %v2321_v42 = vpack.c.bf16 %v2319_v30, %v2319_v30 }
 0x7a6   :  { %4691 = vmatpush3.bf16.xpose.msra.mxu1 %v3129_v40 }
 0x7a7   :  { %4687 = vmatmul.mubr.msk.bf16.vlgmr.msra.gmra.mrb[28].mxu0 %vm345_vm2, %v2321_v42  ;;  %2428 = vst.msk [vmem:[#allocation6 + $0x4] sm:$0xf] %vm557_vm4, %v2321_v42  ;;  %4702 = vmatprep.subr.bf16.mxu1 %v5000_v0 }
 0x7a8   :  { %4697 = vmatpush3.bf16.xpose.msra.mxu0 %v3181_v45  ;;  %4698 = vmatprep.mubr.msk.bf16.mxu0 %vm5001_vm0, %v5000_v0 }
 0x7a9   :  { %4708 = vmatprep.subr.bf16.mxu0 %v5000_v0 }
 0x7aa   :  { %v4491_v46 = vld.sshfl [vmem:[#allocation6] sm:$0x10 pattern:$0x75316420] }
 0x7ab   :  { %v2604_v49 = vcombine.high %v4491_v46, %v4491_v46  ;;  %v4489_v50 = vld.sshfl [vmem:[#allocation6] sm:$0x1 pattern:$0x75316420] }
 0x7ac   :  { %v2527_v52 = vrot.slane %v4489_v50, %v5272_v16 }
 0x7ad   :  { %4693 = vmatmul.mubr.msk.bf16.vlgmr.msra.gmra.mrb[28].mxu1 %vm345_vm2, %v3121_v51  ;;  %v2611_v53 = vrot.slane %v2604_v49, %v5272_v16 }
 0x7ae   :  { %v4488_v55 = vld.sshfl [vmem:[#allocation6 + $0x4] sm:$0x1 pattern:$0x75316420]  ;;  %4704 = vmatprep.mubr.msk.bf16.mxu1 %vm5001_vm0, %v5000_v0  ;;  %v2548_v56 = vrot.slane %v2527_v52, %v5277_v18 }
 0x7af   :  { %4699 = vmatmul.mubr.msk.bf16.vlgmr.msra.gmra.mrb[32].mxu0 %vm345_vm2, %v3173_v54  ;;  %v4492_v57 = vld.sshfl [vmem:[#allocation6 + $0x4] sm:$0x10 pattern:$0x75316420]  ;;  %v2633_v58 = vrot.slane %v2611_v53, %v5277_v18  ;;  %v2541_v59 = vrot.slane %v4488_v55, %v5272_v16 }
 0x7b0   :  { %4710 = vmatprep.mubr.msk.bf16.mxu0 %vm5001_vm0, %v5000_v0  ;;  %v2619_v60 = vcombine.high %v4492_v57, %v4492_v57  ;;  %v2555_v61 = vrot.slane %v2548_v56, %v5277_v18 }
 0x7b1   :  { %v5416_v62 = vrot.slane %v2633_v58, %v5277_v18  ;;  %v2562_v63 = vrot.slane %v2541_v59, %v5277_v18 }
 0x7b2   :  { %v2626_v1 = vrot.slane %v2619_v60, %v5272_v16  ;;  %v2570_v2 = vunpack.c.l.b16 %v2555_v61 }
 0x7b3   :  { %v2569_v3 = vrot.slane %v2562_v63, %v5277_v18  ;;  %v2655_v5 = vunpack.c.l.b16 %v5416_v62  ;;  %v1525_v62 = vrot.slane %v5385_v36, %v5272_v16 }
 0x7b4   :  { %v2647_v4 = vrot.slane %v2626_v1, %v5277_v18  ;;  %v2572_v22 = vrot.slane %v2570_v2, 1 }
 0x7b5   :  { %v2571_v7 = vunpack.c.l.b16 %v2569_v3  ;;  %v2742_v10 = vrot.slane %v2655_v5, 1 }
 0x7b6   :  { %v5424_v21 = vrot.slane %v2647_v4, %v5277_v18 }
 0x7b7   :  { %v5427_v8 = vsel %vm623_vm5, %v2571_v7, %v2572_v22  ;;  %v2491_v27 = vrot.slane %v2571_v7, 7 }
 0x7b8   :  { %v2656_v9 = vunpack.c.l.b16 %v5424_v21 }
 0x7b9   :  { %v2492_v12 = vsel %vm623_vm5, %v2491_v27, %v2570_v2 }
 0x7ba   :  { %v5435_v11 = vsel %vm623_vm5, %v2656_v9, %v2742_v10  ;;  %v2493_v13 = vpack.c.b16 %v2492_v12, %v2492_v12 }
 0x7bc   :  { %v2500_v14 = vrot.slane %v2493_v13, %v5272_v16 }
 0x7be   :  { %v2507_v15 = vrot.slane %v2500_v14, %v5272_v16 }
 0x7c0   :  { %2509 = vst.msk [vmem:[#allocation20 + $0x1] sm:$0x1] %vm641_vm6, %v2507_v15  ;;  %vm1832_vm6 = vcmask 778944  }
 0x876   :  { %v2365_v20 = vpop.f32.mrb[24].mxu1 }
 0x877   :  { %v4682_v26 = vpop.f32.mrb[25].mxu1 }
 0x878   :  { %v2368_v30 = vpop.f32.mrb[26].mxu1 }
 0x879   :  { %v4683_v32 = vpop.f32.mrb[27].mxu1  ;;  %v5457_v30 = vld.sshfl [vmem:[#allocation6] sm:$0x2 pattern:$0x75316420] }
 0x87a   :  { %v2414_v40 = vpop.f32.mrb[28].mxu0 }
 0x87b   :  { %v2420_v42 = vpack.c.bf16 %v2414_v40, %v2365_v20  ;;  %v4688_v45 = vpop.f32.mrb[29].mxu0  ;;  %v5459_v40 = vld.sshfl [vmem:[#allocation6] sm:$0x20 pattern:$0x75316420] }
 0x87c   :  { %v2417_v46 = vpop.f32.mrb[30].mxu0  ;;  %v5465_v45 = vld.sshfl [vmem:[#allocation6 + $0x4] sm:$0x2 pattern:$0x75316420] }
 0x87d   :  { %v4689_v49 = vpop.f32.mrb[31].mxu0  ;;  %v5467_v46 = vld.sshfl [vmem:[#allocation6 + $0x4] sm:$0x20 pattern:$0x75316420] }
 0x87e   :  { %v4765_v49 = vld [vmem:[#allocation17] sm:$0xff]  }
 0x880   :  { %v3165_v50 = vpop.f32.mrb[28].mxu1 }
 0x881   :  { %v4694_v51 = vpop.f32.mrb[29].mxu1  ;;  %v3223_v52 = vsel %vm345_vm2, %v3165_v50, -inf }
 0x882   :  { %3224 = vmax.xlane.f32.xlu0 %v3223_v52  ;;  %v3168_v53 = vpop.f32.mrb[30].mxu1  ;;  %v3217_v54 = vpop.f32.mrb[32].mxu0 }
 0x883   :  { %v4695_v55 = vpop.f32.mrb[31].mxu1  ;;  %v4700_v56 = vpop.f32.mrb[33].mxu0  ;;  %v3226_v57 = vsel %vm345_vm2, %v3217_v54, -inf }
 0x884   :  { %3227 = vmax.xlane.f32.xlu1 %v3226_v57  ;;  %v3220_v58 = vpop.f32.mrb[34].mxu0 }
 0x885   :  { %v4701_v59 = vpop.f32.mrb[35].mxu0 }
 0x895   :  { %3297 = vrot.lane.b32.xlu1 %v5245_v35, %s5006_s29 }
 0x899   :  { %1487 = vrot.lane.b32.xlu1 %v1485_v48, %s5007_s30 }
 0x89d   :  { %2422 = vrot.lane.b32.xlu1 %v2420_v42, %s5008_s11 }
 0x90f   :  { %v3225_v60 = vpop.xlane.xlu0 %3224 }
 0x910   :  { %v3229_v61 = vsub.f32 %v3165_v50, %v3225_v60  ;;  %v4766_v50 = vld [vmem:[#allocation17 + $0x8] sm:$0xff]  }
 0x911   :  { %v3228_v63 = vpop.xlane.xlu1 %3227 }
 0x912   :  { %v3231_v1 = vmul.f32 1.442695, %v3229_v61  ;;  %v3230_v2 = vsub.f32 %v3217_v54, %v3228_v63 }
 0x914   :  { %4792 = vpow2.f32 %v3231_v1  ;;  %v3233_v3 = vmul.f32 1.442695, %v3230_v2  ;;  %v738_v1 = vcombine.high %v5319_v23, %v5319_v23  ;;  %v4039_v2 = vunpack.c.l.bf16 %v5194_v6 }
 0x915   :  { %v3298_v4 = vpop.permute.xlu1 %3297 }
 0x916   :  { %4794 = vpow2.f32 %v3233_v3  ;;  %v3303_v35 = vsel %vm465_vm3, %v3298_v4, 0  ;;  %v4040_v4 = vunpack.c.h.bf16 %v5194_v6 }
 0x917   :  { %4709 = vmatpush3.bf16.msra.mxu0 %v3303_v35 }
 0x919   :  { %v1488_v7 = vpop.permute.xlu1 %1487 }
 0x91a   :  { %1491 = vst.msk [vmem:[#allocation5] sm:$0xff] %vm1490_vm7, %v1488_v7  ;;  %v745_v7 = vrot.slane %v738_v1, %v5272_v16  ;;  %vm1918_vm7 = vcmask 844544  }
 0x91c   :  { %v767_v6 = vrot.slane %v745_v7, %v5277_v18 }
 0x91d   :  { %v2423_v43 = vpop.permute.xlu1 %2422 }
 0x91e   :  { %v4793_v47 = vpop.eup %4792  ;;  %2426 = vst.msk [vmem:[#allocation5] sm:$0xff] %vm2425_vm8, %v2423_v43  ;;  %vm5845_vm8 = vcmask 910144  }
 0x91f   :  { %v3235_v48 = vsel %vm345_vm2, %v4793_v47, 0.0 }
 0x920   :  { %v4795_v22 = vpop.eup %4794  ;;  %3236 = vadd.xlane.f32.xlu0 %v3235_v48 }
 0x921   :  { %v3238_v27 = vsel %vm345_vm2, %v4795_v22, 0.0 }
 0x924   :  { %3239 = vadd.xlane.f32.xlu0 %v3238_v27 }
 0x93a   :  { %3248 = vrot.lane.b32.xlu0 %v5243_v34, %s5006_s29 }
 0x9ad   :  { %v3237_v10 = vpop.xlane.xlu0 %3236 }
 0x9ae   :  { %4796 = vrcp.f32 %v3237_v10 }
 0x9b1   :  { %v3240_v12 = vpop.xlane.xlu0 %3239 }
 0x9b2   :  { %4798 = vrcp.f32 %v3240_v12 }
 0x9b5   :  { %v3249_v13 = vpop.permute.xlu0 %3248 }
 0x9b6   :  { %v3254_v14 = vsel %vm465_vm3, %v3249_v13, 0  ;;  %vm1660_vm3 = vcmask 647744  }
 0x9b7   :  { %4703 = vmatpush3.bf16.msra.mxu1 %v3254_v14 }
 0x9b8   :  { %v4797_v15 = vpop.eup %4796  ;;  %4714 = vmatprep.subr.bf16.mxu1 %v5000_v0 }
 0x9b9   :  { %v3243_v20 = vmul.f32 %v4797_v15, %v4793_v47  ;;  %v1098_v15 = vcombine.high %v5334_v39, %v5334_v39 }
 0x9bb   :  { %v3245_v26 = vpack.c.bf16 %v3243_v20, %v3243_v20  ;;  %v916_v20 = vrot.slane %v5321_v24, %v5272_v16 }
 0x9bc   :  { %v4799_v32 = vpop.eup %4798 }
 0x9bd   :  { %v3244_v42 = vmul.f32 %v4799_v32, %v4795_v22  ;;  %4705 = vmatmul.mubr.msk.bf16.vlgmr.msra.gmra.mrb[32].mxu1 %vm345_vm2, %v3245_v26  ;;  %3352 = vst.msk [vmem:[#allocation6] sm:$0xf] %vm557_vm4, %v3245_v26  ;;  %v931_v22 = vrot.slane %v5331_v33, %v5272_v16  ;;  %v774_v33 = vrot.slane %v767_v6, %v5277_v18 }
 0x9be   :  { %4718 = vmatprep.mubr.msk.bf16.mxu1 %vm5001_vm0, %v5000_v0  ;;  %4715 = vmatpush3.bf16.msra.mxu1 %v4765_v49  ;;  %vm1245_vm0 = vcmask 516544  }
 0x9bf   :  { %v3246_v34 = vpack.c.bf16 %v3244_v42, %v3244_v42  ;;  %4716 = vmatprep.subr.bf16.mxu1 %v5000_v0  ;;  %v753_v0 = vcombine.high %v5327_v31, %v5327_v31  ;;  %v932_v14 = vcombine.high %v931_v22, %v931_v22  ;;  %v1105_v42 = vrot.slane %v1098_v15, %v5272_v16 }
 0x9c0   :  { %v789_v49 = vunpack.c.l.b16 %v774_v33  ;;  %v1688_v22 = vcombine.high %v5387_v38, %v5387_v38 }
 0x9c1   :  { %4711 = vmatmul.mubr.msk.bf16.vlgmr.msra.gmra.mrb[36].mxu0 %vm345_vm2, %v3246_v34  ;;  %3353 = vst.msk [vmem:[#allocation6 + $0x4] sm:$0xf] %vm557_vm4, %v3246_v34  ;;  %v760_v63 = vrot.slane %v753_v0, %v5272_v16  ;;  %v953_v32 = vrot.slane %v932_v14, %v5277_v18  ;;  %v1082_v34 = vcombine.high %v5323_v29, %v5323_v29  ;;  %vm1576_vm2 = vcmask 582144  }
 0x9c2   :  { %4717 = vmatpush3.bf16.msra.mxu1 %v4766_v50  ;;  %v917_v50 = vcombine.high %v916_v20, %v916_v20  ;;  %v877_v21 = vrot.slane %v789_v49, 1  ;;  %v1695_v38 = vrot.slane %v1688_v22, %v5272_v16  ;;  %vm1746_vm4 = vcmask 713344  }
 0x9c3   :  { %v781_v3 = vrot.slane %v760_v63, %v5277_v18  ;;  %v960_v24 = vrot.slane %v953_v32, %v5277_v18 }
 0x9c5   :  { %v788_v31 = vrot.slane %v781_v3, %v5277_v18 }
 0x9c7   :  { %v790_v13 = vunpack.c.l.b16 %v788_v31  ;;  %v1546_v31 = vrot.slane %v1525_v62, %v5277_v18 }
 0x9c9   :  { %v791_v26 = vrot.slane %v790_v13, 7  ;;  %v878_v63 = vsel %vm623_vm5, %v790_v13, %v877_v21  ;;  %v1553_v33 = vrot.slane %v1546_v31, %v5277_v18  ;;  %v1851_v21 = vrot.slane %v5379_v25, %v5272_v16 }
 0x9ca   :  { %v879_v7 = vpack.c.b16 %v878_v63, %v878_v63  ;;  %v2017_v25 = vcombine.high %v5381_v28, %v5381_v28 }
 0x9cb   :  { %v792_v39 = vsel %vm623_vm5, %v791_v26, %v789_v49 }
 0x9cc   :  { %v793_v29 = vpack.c.b16 %v792_v39, %v792_v39  ;;  %v1866_v39 = vrot.slane %v5392_v41, %v5272_v16  ;;  %v2033_v41 = vcombine.high %v5394_v44, %v5394_v44 }
 0x9ce   :  { %v2040_v44 = vrot.slane %v2033_v41, %v5272_v16 }
 0x9d0   :  { %v2041_v31 = vcombine.high %v2040_v44, %v2040_v44 }
 0xa90   :  { %v3290_v51 = vpop.f32.mrb[32].mxu1 }
 0xa91   :  { %v4706_v52 = vpop.f32.mrb[33].mxu1 }
 0xa92   :  { %v3293_v53 = vpop.f32.mrb[34].mxu1  ;;  %v2657_v52 = vrot.slane %v2656_v9, 7 }
 0xa93   :  { %v4707_v54 = vpop.f32.mrb[35].mxu1  ;;  %v1106_v53 = vcombine.high %v1105_v42, %v1105_v42 }
 0xa94   :  { %v3339_v55 = vpop.f32.mrb[36].mxu0  ;;  %v1089_v54 = vrot.slane %v1082_v34, %v5272_v16 }
 0xa95   :  { %v3345_v56 = vpack.c.bf16 %v3339_v55, %v3290_v51  ;;  %v4712_v57 = vpop.f32.mrb[37].mxu0  ;;  %v707_v51 = vpack.c.b16 %v5292_v37, %v5292_v37  ;;  %v939_v55 = vrot.slane %v917_v50, %v5277_v18  ;;  %v962_v37 = vunpack.c.l.b16 %v960_v24 }
 0xa96   :  { %v3342_v58 = vpop.f32.mrb[38].mxu0  ;;  %v2658_v57 = vsel %vm623_vm5, %v2657_v52, %v2655_v5  ;;  %v1555_v50 = vunpack.c.l.b16 %v1553_v33 }
 0xa97   :  { %3347 = vrot.lane.b32.xlu0 %v3345_v56, %s5009_s3  ;;  %v4713_v59 = vpop.f32.mrb[39].mxu0  ;;  %v714_v56 = vrot.slane %v707_v51, %v5272_v16  ;;  %v1127_v58 = vrot.slane %v1106_v53, %v5277_v18  ;;  %v946_v9 = vrot.slane %v939_v55, %v5277_v18  ;;  %v2659_v0 = vpack.c.b16 %v2658_v57, %v2658_v57 }
 0xa98   :  { %v1090_v59 = vcombine.high %v1089_v54, %v1089_v54  ;;  %v963_v1 = vrot.slane %v962_v37, 7  ;;  %v1716_v51 = vrot.slane %v1695_v38, %v5277_v18 }
 0xa99   :  { %v961_v3 = vunpack.c.l.b16 %v946_v9 }
 0xa9a   :  { %v1113_v5 = vrot.slane %v1090_v59, %v5277_v18  ;;  %v1723_v57 = vrot.slane %v1716_v51, %v5277_v18 }
 0xa9c   :  { %v1120_v36 = vrot.slane %v1113_v5, %v5277_v18  ;;  %v1725_v63 = vunpack.c.l.b16 %v1723_v57  ;;  %v1852_v5 = vcombine.high %v1851_v21, %v1851_v21 }
 0xa9e   :  { %v1135_v20 = vunpack.c.l.b16 %v1120_v36  ;;  %v1874_v36 = vrot.slane %v1852_v5, %v5277_v18 }
 0xaa0   :  { %v1225_v52 = vrot.slane %v1135_v20, 1  ;;  %v1881_v33 = vrot.slane %v1874_v36, %v5277_v18 }
 0xb09   :  { %v3348_v60 = vpop.permute.xlu0 %3347 }
 0xb0a   :  { %3351 = vst.msk [vmem:[#allocation5] sm:$0xff] %vm3350_vm9, %v3348_v60  ;;  %v721_v60 = vrot.slane %v714_v56, %v5272_v16  ;;  %vm2092_vm9 = vcmask 975744  }
 0xb11   :  { %v4034_v61 = vld [vmem:[#allocation5] sm:$0xff] }
 0xb12   :  { %4719 = vmatmul.mubr.msk.bf16.vlgmr.msra.gmra.mrb[36].mxu1 %vm146_vm1, %v4034_v61  ;;  %v800_v61 = vrot.slane %v793_v29, %v5272_v16  ;;  %v1556_v29 = vrot.slane %v1555_v50, 7 }
 0xbe5   :  { %v4090_v35 = vpop.f32.mrb[36].mxu1 }
 0xbe6   :  { %v5483_v43 = vadd.f32 %v4090_v35, %v4039_v2  ;;  %v4720_v47 = vpop.f32.mrb[37].mxu1  ;;  %v1134_v2 = vrot.slane %v1127_v58, %v5277_v18  ;;  %v2666_v35 = vrot.slane %v2659_v0, %v5272_v16 }
 0xbe7   :  { %v4093_v48 = vpop.f32.mrb[38].mxu1  ;;  %v964_v47 = vsel %vm623_vm5, %v963_v1, %v961_v3 }
 0xbe8   :  { %v5488_v27 = vadd.f32 %v4093_v48, %v4040_v4  ;;  %v4721_v23 = vpop.f32.mrb[39].mxu1  ;;  %v4097_v10 = vsel %vm146_vm1, %v5483_v43, 0.0  ;;  %v807_v4 = vrot.slane %v800_v61, %v5272_v16  ;;  %v1136_v48 = vunpack.c.l.b16 %v1134_v2 }
 0xbe9   :  { %4098 = vadd.xlane.f32.xlu0 %v4097_v10  ;;  %v1049_v23 = vrot.slane %v961_v3, 1  ;;  %v1511_v10 = vrot.slane %v5375_v17, %v5272_v16  ;;  %v2673_v6 = vrot.slane %v2666_v35, %v5272_v16  ;;  %v965_v13 = vpack.c.b16 %v964_v47, %v964_v47 }
 0xbea   :  { %v4100_v12 = vsel %vm146_vm1, %v5488_v27, 0.0  ;;  %v1137_v15 = vrot.slane %v1136_v48, 7  ;;  %v1673_v17 = vcombine.high %v5377_v19, %v5377_v19  ;;  %v1226_v56 = vsel %vm623_vm5, %v1136_v48, %v1225_v52 }
 0xbeb   :  { %4101 = vadd.xlane.f32.xlu1 %v4100_v12  ;;  %v886_v12 = vrot.slane %v879_v7, %v5272_v16  ;;  %v1050_v14 = vsel %vm623_vm5, %v962_v37, %v1049_v23  ;;  %v1532_v26 = vrot.slane %v1511_v10, %v5277_v18  ;;  %v972_v42 = vrot.slane %v965_v13, %v5272_v16 }
 0xbec   :  { %v1051_v34 = vpack.c.b16 %v1050_v14, %v1050_v14  ;;  %v1138_v49 = vsel %vm623_vm5, %v1137_v15, %v1135_v20  ;;  %v1680_v19 = vrot.slane %v1673_v17, %v5272_v16  ;;  %v1867_v37 = vcombine.high %v1866_v39, %v1866_v39 }
 0xbed   :  { %v893_v32 = vrot.slane %v886_v12, %v5272_v16  ;;  %v1539_v24 = vrot.slane %v1532_v26, %v5277_v18  ;;  %v979_v53 = vrot.slane %v972_v42, %v5272_v16  ;;  %v1139_v55 = vpack.c.b16 %v1138_v49, %v1138_v49 }
 0xbee   :  { %v1058_v54 = vrot.slane %v1051_v34, %v5272_v16  ;;  %v1702_v59 = vrot.slane %v1680_v19, %v5277_v18  ;;  %v1227_v61 = vpack.c.b16 %v1226_v56, %v1226_v56  ;;  %v1888_v1 = vrot.slane %v1867_v37, %v5277_v18 }
 0xbef   :  { %v1554_v58 = vunpack.c.l.b16 %v1539_v24  ;;  %v1726_v47 = vrot.slane %v1725_v63, 7  ;;  %v2024_v23 = vrot.slane %v2017_v25, %v5272_v16  ;;  %v2062_v14 = vrot.slane %v2041_v31, %v5277_v18 }
 0xbf0   :  { %v1065_v9 = vrot.slane %v1058_v54, %v5272_v16  ;;  %v1709_v62 = vrot.slane %v1702_v59, %v5277_v18  ;;  %v1895_v48 = vrot.slane %v1888_v1, %v5277_v18  ;;  %v1896_v49 = vunpack.c.l.b16 %v1881_v33 }
 0xbf1   :  { %v1557_v0 = vsel %vm623_vm5, %v1556_v29, %v1554_v58  ;;  %v1640_v2 = vrot.slane %v1554_v58, 1  ;;  %v2025_v38 = vcombine.high %v2024_v23, %v2024_v23  ;;  %v2069_v34 = vrot.slane %v2062_v14, %v5277_v18 }
 0xbf2   :  { %v1558_v35 = vpack.c.b16 %v1557_v0, %v1557_v0  ;;  %v1724_v22 = vunpack.c.l.b16 %v1709_v62  ;;  %v1897_v13 = vunpack.c.l.b16 %v1895_v48  ;;  %v2795_v23 = vrot.slane %v5465_v45, %v5272_v16 }
 0xbf3   :  { %v1641_v7 = vsel %vm623_vm5, %v1555_v50, %v1640_v2  ;;  %v2048_v50 = vrot.slane %v2025_v38, %v5277_v18  ;;  %v2071_v19 = vunpack.c.l.b16 %v2069_v34  ;;  %v2944_v33 = vcombine.high %v5459_v40, %v5459_v40 }
 0xbf4   :  { %v1565_v10 = vrot.slane %v1558_v35, %v5272_v16  ;;  %v1727_v12 = vsel %vm623_vm5, %v1726_v47, %v1724_v22  ;;  %v1812_v15 = vrot.slane %v1724_v22, 1  ;;  %v1898_v42 = vrot.slane %v1897_v13, 7 }
 0xbf5   :  { %v1728_v17 = vpack.c.b16 %v1727_v12, %v1727_v12  ;;  %v2055_v54 = vrot.slane %v2048_v50, %v5277_v18  ;;  %v2072_v37 = vrot.slane %v2071_v19, 7 }
 0xbf6   :  { %v1572_v20 = vrot.slane %v1565_v10, %v5272_v16  ;;  %v1899_v24 = vsel %vm623_vm5, %v1898_v42, %v1896_v49 }
 0xbf7   :  { %v1735_v39 = vrot.slane %v1728_v17, %v5272_v16  ;;  %v1900_v29 = vpack.c.b16 %v1899_v24, %v1899_v24  ;;  %v2070_v41 = vunpack.c.l.b16 %v2055_v54  ;;  %v4518_v54 = vld.sshfl [vmem:[#allocation6 + $0x4] sm:$0x10 pattern:$0x75316420] }
 0xbf9   :  { %v1907_v59 = vrot.slane %v1900_v29, %v5272_v16 }
 0xbfc   :  { %722 = vrot.lane.b32.xlu1 %v721_v60, %s5007_s30  ;;  %v1146_v60 = vrot.slane %v1139_v55, %v5272_v16  ;;  %v1742_v55 = vrot.slane %v1735_v39, %v5272_v16  ;;  %v2574_v39 = vpack.c.b16 %v5427_v8, %v5427_v8 }
 0xbfe   :  { %v1153_v3 = vrot.slane %v1146_v60, %v5272_v16  ;;  %v2160_v60 = vrot.slane %v2070_v41, 1  ;;  %v2581_v29 = vrot.slane %v2574_v39, %v5272_v16 }
 0xc00   :  { %808 = vrot.lane.b32.xlu1 %v807_v4, %s5008_s11  ;;  %v1234_v4 = vrot.slane %v1227_v61, %v5272_v16  ;;  %v1914_v61 = vrot.slane %v1907_v59, %v5272_v16  ;;  %v2161_v1 = vsel %vm623_vm5, %v2071_v19, %v2160_v60  ;;  %v3546_v59 = vcombine.high %v4518_v54, %v4518_v54 }
 0xc01   :  { %v2162_v62 = vpack.c.b16 %v2161_v1, %v2161_v1  ;;  %v4517_v1 = vld.sshfl [vmem:[#allocation6] sm:$0x10 pattern:$0x75316420] }
 0xc02   :  { %v1241_v28 = vrot.slane %v1234_v4, %v5272_v16 }
 0xc03   :  { %v2169_v25 = vrot.slane %v2162_v62, %v5272_v16 }
 0xc04   :  { %2674 = vrot.lane.b32.xlu1 %v2673_v6, %s5008_s11  ;;  %v1642_v6 = vpack.c.b16 %v1641_v7, %v1641_v7 }
 0xc06   :  { %v1649_v26 = vrot.slane %v1642_v6, %v5272_v16  ;;  %v2960_v6 = vcombine.high %v5467_v46, %v5467_v46 }
 0xc08   :  { %894 = vrot.lane.b32.xlu1 %v893_v32, %s5009_s3  ;;  %v1813_v32 = vsel %vm623_vm5, %v1725_v63, %v1812_v15  ;;  %v1656_v51 = vrot.slane %v1649_v26, %v5272_v16  ;;  %v2967_v15 = vrot.slane %v2960_v6, %v5272_v16  ;;  %v4526_v6 = vld.sshfl [vmem:[#allocation6 + $0x4] sm:$0x20 pattern:$0x75316420] }
 0xc09   :  { %v1814_v52 = vpack.c.b16 %v1813_v32, %v1813_v32 }
 0xc0a   :  { %v2968_v26 = vcombine.high %v2967_v15, %v2967_v15 }
 0xc0b   :  { %v1821_v56 = vrot.slane %v1814_v52, %v5272_v16 }
 0xc0c   :  { %980 = vrot.lane.b32.xlu1 %v979_v53, %s5010_s16  ;;  %v1984_v53 = vrot.slane %v1896_v49, 1  ;;  %v2989_v34 = vrot.slane %v2968_v26, %v5277_v18  ;;  %v4514_v49 = vld.sshfl [vmem:[#allocation6 + $0x4] sm:$0x1 pattern:$0x75316420] }
 0xc0d   :  { %v1828_v58 = vrot.slane %v1821_v56, %v5272_v16  ;;  %v3385_v19 = vrot.slane %v4514_v49, %v5272_v16 }
 0xc0e   :  { %v1985_v57 = vsel %vm623_vm5, %v1897_v13, %v1984_v53  ;;  %v2780_v13 = vrot.slane %v5457_v30, %v5272_v16  ;;  %v2951_v30 = vrot.slane %v2944_v33, %v5272_v16  ;;  %v2996_v24 = vrot.slane %v2989_v34, %v5277_v18 }
 0xc0f   :  { %v1986_v21 = vpack.c.b16 %v1985_v57, %v1985_v57  ;;  %v2744_v57 = vpack.c.b16 %v5435_v11, %v5435_v11 }
 0xc10   :  { %1066 = vrot.lane.b32.xlu1 %v1065_v9, %s5011_s12  ;;  %v2073_v9 = vsel %vm623_vm5, %v2072_v37, %v2070_v41  ;;  %v2781_v38 = vcombine.high %v2780_v13, %v2780_v13  ;;  %v2952_v40 = vcombine.high %v2951_v30, %v2951_v30  ;;  %v4513_v37 = vld.sshfl [vmem:[#allocation6] sm:$0x1 pattern:$0x75316420]  ;;  %v2998_v41 = vunpack.c.l.b16 %v2996_v24 }
 0xc11   :  { %v1993_v0 = vrot.slane %v1986_v21, %v5272_v16  ;;  %v2074_v63 = vpack.c.b16 %v2073_v9, %v2073_v9  ;;  %v3371_v60 = vrot.slane %v4513_v37, %v5272_v16  ;;  %v2751_v11 = vrot.slane %v2744_v57, %v5272_v16 }
 0xc12   :  { %v2803_v17 = vrot.slane %v2781_v38, %v5277_v18  ;;  %v2975_v53 = vrot.slane %v2952_v40, %v5277_v18 }
 0xc13   :  { %v2000_v44 = vrot.slane %v1993_v0, %v5272_v16  ;;  %v2081_v2 = vrot.slane %v2074_v63, %v5272_v16  ;;  %v2588_v0 = vrot.slane %v2581_v29, %v5272_v16 }
 0xc14   :  { %1154 = vrot.lane.b32.xlu1 %v1153_v3, %s5012_s13  ;;  %v2176_v3 = vrot.slane %v2169_v25, %v5272_v16  ;;  %v2810_v50 = vrot.slane %v2803_v17, %v5277_v18  ;;  %v2982_v21 = vrot.slane %v2975_v53, %v5277_v18 }
 0xc15   :  { %v2088_v5 = vrot.slane %v2081_v2, %v5272_v16  ;;  %v2999_v2 = vrot.slane %v2998_v41, 7 }
 0xc16   :  { %v2997_v25 = vunpack.c.l.b16 %v2982_v21 }
 0xc18   :  { %1242 = vrot.lane.b32.xlu1 %v1241_v28, %s5013_s2 }
 0xc1c   :  { %1573 = vrot.lane.b32.xlu1 %v1572_v20, %s4994_s25 }
 0xc20   :  { %1657 = vrot.lane.b32.xlu1 %v1656_v51, %s5014_s22 }
 0xc24   :  { %1743 = vrot.lane.b32.xlu1 %v1742_v55, %s5015_s15  ;;  %v2825_v55 = vunpack.c.l.b16 %v2810_v50 }
 0xc26   :  { %v2912_v9 = vrot.slane %v2825_v55, 1 }
 0xc28   :  { %1829 = vrot.lane.b32.xlu1 %v1828_v58, %s5016_s17  ;;  %v3406_v58 = vrot.slane %v3385_v19, %v5277_v18 }
 0xc2a   :  { %v3413_v62 = vrot.slane %v3406_v58, %v5277_v18 }
 0xc2c   :  { %1915 = vrot.lane.b32.xlu1 %v1914_v61, %s5017_s18 }
 0xc30   :  { %2001 = vrot.lane.b32.xlu1 %v2000_v44, %s5006_s29 }
 0xc34   :  { %2089 = vrot.lane.b32.xlu1 %v2088_v5, %s5005_s28  ;;  %v3553_v5 = vrot.slane %v3546_v59, %v5272_v16 }
 0xc38   :  { %2177 = vrot.lane.b32.xlu1 %v2176_v3, %s5002_s5  ;;  %v4522_v3 = vld.sshfl [vmem:[#allocation6 + $0x4] sm:$0x2 pattern:$0x75316420] }
 0xc76   :  { %v4099_v4 = vpop.xlane.xlu0 %4098 }
 0xc77   :  { %v4104_v35 = vmul.f32 0.03125, %v4099_v4  ;;  %v3392_v4 = vrot.slane %v3371_v60, %v5277_v18 }
 0xc78   :  { %v4102_v7 = vpop.xlane.xlu1 %4101 }
 0xc79   :  { %v4105_v47 = vmul.f32 0.03125, %v4102_v7  ;;  %v5618_v48 = vsub.f32 %v5483_v43, %v4104_v35  ;;  %v3531_v35 = vcombine.high %v4517_v1, %v4517_v1 }
 0xc7b   :  { %v5621_v31 = vsub.f32 %v5488_v27, %v4105_v47  ;;  %v4108_v10 = vmul.f32 %v5618_v48, %v5618_v48  ;;  %v2796_v27 = vcombine.high %v2795_v23, %v2795_v23  ;;  %v2758_v47 = vrot.slane %v2751_v11, %v5272_v16 }
 0xc7c   :  { %v723_v22 = vpop.permute.xlu1 %722  ;;  %v3000_v23 = vsel %vm623_vm5, %v2999_v2, %v2997_v25  ;;  %v3538_v13 = vrot.slane %v3531_v35, %v5272_v16 }
 0xc7d   :  { %726 = vst.msk [vmem:[#allocation20] sm:$0x1] %vm725_vm10, %v723_v22  ;;  %v4109_v36 = vmul.f32 %v5621_v31, %v5621_v31  ;;  %v4110_v12 = vsel %vm146_vm1, %v4108_v10, 0.0  ;;  %v2817_v14 = vrot.slane %v2796_v27, %v5277_v18  ;;  %v3574_v10 = vrot.slane %v3553_v5, %v5277_v18 }
 0xc7e   :  { %v3086_v27 = vrot.slane %v2997_v25, 1  ;;  %v3001_v38 = vpack.c.b16 %v3000_v23, %v3000_v23  ;;  %v3560_v34 = vrot.slane %v3538_v13, %v5277_v18 }
 0xc7f   :  { %v4113_v28 = vsel %vm146_vm1, %v4109_v36, 0.0  ;;  %v2824_v46 = vrot.slane %v2817_v14, %v5277_v18  ;;  %v3581_v30 = vrot.slane %v3574_v10, %v5277_v18 }
 0xc80   :  { %4114 = vadd.xlane.f32.xlu0 %v4113_v28  ;;  %v809_v43 = vpop.permute.xlu1 %808  ;;  %v3415_v28 = vunpack.c.l.b16 %v3413_v62 }
 0xc81   :  { %812 = vst.msk [vmem:[#allocation20] sm:$0x1] %vm811_vm11, %v809_v43  ;;  %v2826_v42 = vunpack.c.l.b16 %v2824_v46  ;;  %v3722_v43 = vrot.slane %v4522_v3, %v5272_v16  ;;  %v4521_v46 = vld.sshfl [vmem:[#allocation6] sm:$0x2 pattern:$0x75316420]  ;;  %v3583_v19 = vunpack.c.l.b16 %v3581_v30 }
 0xc82   :  { %v3416_v26 = vrot.slane %v3415_v28, 7  ;;  %v3707_v40 = vrot.slane %v4521_v46, %v5272_v16 }
 0xc83   :  { %v2827_v52 = vrot.slane %v2826_v42, 7  ;;  %v2913_v44 = vsel %vm623_vm5, %v2826_v42, %v2912_v9  ;;  %v3723_v17 = vcombine.high %v3722_v43, %v3722_v43  ;;  %v3584_v21 = vrot.slane %v3583_v19, 7 }
 0xc84   :  { %4111 = vadd.xlane.f32.xlu0 %v4110_v12  ;;  %v5637_v45 = vpop.permute.xlu1 %2674  ;;  %v2914_v36 = vpack.c.b16 %v2913_v44, %v2913_v44  ;;  %v3399_v12 = vrot.slane %v3392_v4, %v5277_v18  ;;  %v3708_v29 = vcombine.high %v3707_v40, %v3707_v40 }
 0xc85   :  { %v2828_v8 = vsel %vm623_vm5, %v2827_v52, %v2825_v55  ;;  %v4525_v52 = vld.sshfl [vmem:[#allocation6] sm:$0x20 pattern:$0x75316420]  ;;  %v3744_v53 = vrot.slane %v3723_v17, %v5277_v18 }
 0xc86   :  { %v2829_v63 = vpack.c.b16 %v2828_v8, %v2828_v8  ;;  %v2921_v33 = vrot.slane %v2914_v36, %v5272_v16  ;;  %v3414_v42 = vunpack.c.l.b16 %v3399_v12  ;;  %v3871_v57 = vcombine.high %v4525_v52, %v4525_v52 }
 0xc87   :  { %v3751_v9 = vrot.slane %v3744_v53, %v5277_v18 }
 0xc88   :  { %v895_v20 = vpop.permute.xlu1 %894  ;;  %v2836_v22 = vrot.slane %v2829_v63, %v5272_v16  ;;  %v2928_v50 = vrot.slane %v2921_v33, %v5272_v16  ;;  %v3417_v24 = vsel %vm623_vm5, %v3416_v26, %v3414_v42  ;;  %v3499_v55 = vrot.slane %v3414_v42, 1 }
 0xc89   :  { %898 = vst.msk [vmem:[#allocation20] sm:$0x1] %vm897_vm12, %v895_v20  ;;  %v3087_v20 = vsel %vm623_vm5, %v2998_v41, %v3086_v27  ;;  %v3418_v58 = vpack.c.b16 %v3417_v24, %v3417_v24  ;;  %v3878_v11 = vrot.slane %v3871_v57, %v5272_v16  ;;  %v3753_v5 = vunpack.c.l.b16 %v3751_v9 }
 0xc8a   :  { %v2843_v15 = vrot.slane %v2836_v22, %v5272_v16  ;;  %v3088_v39 = vpack.c.b16 %v3087_v20, %v3087_v20  ;;  %v3500_v59 = vsel %vm623_vm5, %v3415_v28, %v3499_v55 }
 0xc8b   :  { %v3425_v44 = vrot.slane %v3418_v58, %v5272_v16  ;;  %v3501_v2 = vpack.c.b16 %v3500_v59, %v3500_v59  ;;  %v3879_v35 = vcombine.high %v3878_v11, %v3878_v11  ;;  %v3754_v28 = vrot.slane %v3753_v5, 7 }
 0xc8c   :  { %v981_v32 = vpop.permute.xlu1 %980  ;;  %v3095_v41 = vrot.slane %v3088_v39, %v5272_v16 }
 0xc8d   :  { %984 = vst.msk [vmem:[#allocation20] sm:$0x1] %vm983_vm13, %v981_v32  ;;  %v3887_v32 = vcombine.high %v4526_v6, %v4526_v6  ;;  %v3508_v22 = vrot.slane %v3501_v2, %v5272_v16  ;;  %v3902_v27 = vrot.slane %v3879_v35, %v5277_v18 }
 0xc8e   :  { %v3102_v1 = vrot.slane %v3095_v41, %v5272_v16 }
 0xc8f   :  { %v3894_v54 = vrot.slane %v3887_v32, %v5272_v16  ;;  %v3515_v12 = vrot.slane %v3508_v22, %v5272_v16  ;;  %v3909_v20 = vrot.slane %v3902_v27, %v5277_v18 }
 0xc90   :  { %v1067_v51 = vpop.permute.xlu1 %1066 }
 0xc91   :  { %1070 = vst.msk [vmem:[#allocation20] sm:$0x1] %vm1069_vm14, %v1067_v51  ;;  %v3008_v51 = vrot.slane %v3001_v38, %v5272_v16  ;;  %v3895_v60 = vcombine.high %v3894_v54, %v3894_v54 }
 0xc93   :  { %v3015_v8 = vrot.slane %v3008_v51, %v5272_v16  ;;  %v3916_v25 = vrot.slane %v3895_v60, %v5277_v18 }
 0xc94   :  { %v1155_v56 = vpop.permute.xlu1 %1154 }
 0xc95   :  { %1158 = vst.msk [vmem:[#allocation20] sm:$0x1] %vm1157_vm15, %v1155_v56  ;;  %v3567_v56 = vrot.slane %v3560_v34, %v5277_v18  ;;  %v3923_v10 = vrot.slane %v3916_v25, %v5277_v18  ;;  %v3924_v34 = vunpack.c.l.b16 %v3909_v20 }
 0xc97   :  { %v3925_v33 = vunpack.c.l.b16 %v3923_v10  ;;  %v4013_v51 = vrot.slane %v3924_v34, 1 }
 0xc98   :  { %v1243_v61 = vpop.permute.xlu1 %1242 }
 0xc99   :  { %1246 = vst.msk [vmem:[#allocation20] sm:$0x1] %vm1245_vm0, %v1243_v61  ;;  %v3582_v61 = vunpack.c.l.b16 %v3567_v56  ;;  %v3926_v42 = vrot.slane %v3925_v33, 7 }
 0xc9a   :  { %2589 = vrot.lane.b32.xlu0 %v2588_v0, %s5007_s30  ;;  %v3730_v0 = vrot.slane %v3708_v29, %v5277_v18 }
 0xc9b   :  { %v3585_v62 = vsel %vm623_vm5, %v3584_v21, %v3582_v61  ;;  %v3669_v3 = vrot.slane %v3582_v61, 1  ;;  %v4532_v61 = vld [vmem:[%s5841_s7] ss:$0 sm:$0xff]  ;;  %s5018_s7 = smov [#allocation20]  }
 0xc9c   :  { %v1574_v7 = vpop.permute.xlu1 %1573  ;;  %v3737_v4 = vrot.slane %v3730_v0, %v5277_v18  ;;  %v3586_v36 = vpack.c.b16 %v3585_v62, %v3585_v62  ;;  %v3927_v18 = vsel %vm623_vm5, %v3926_v42, %v3924_v34 }
 0xc9d   :  { %1577 = vst.msk [vmem:[#allocation20] sm:$0x1] %vm1576_vm2, %v1574_v7  ;;  %v3670_v23 = vsel %vm623_vm5, %v3583_v19, %v3669_v3  ;;  %v3928_v24 = vpack.c.b16 %v3927_v18, %v3927_v18  ;;  %v4014_v19 = vsel %vm623_vm5, %v3925_v33, %v4013_v51 }
 0xc9e   :  { %2759 = vrot.lane.b32.xlu0 %v2758_v47, %s5009_s3  ;;  %v3432_v47 = vrot.slane %v3425_v44, %v5272_v16  ;;  %v3752_v43 = vunpack.c.l.b16 %v3737_v4  ;;  %v3593_v13 = vrot.slane %v3586_v36, %v5272_v16  ;;  %v4015_v55 = vpack.c.b16 %v4014_v19, %v4014_v19 }
 0xc9f   :  { %v3935_v54 = vrot.slane %v3928_v24, %v5272_v16 }
 0xca0   :  { %v1658_v14 = vpop.permute.xlu1 %1657  ;;  %v3839_v38 = vrot.slane %v3752_v43, 1  ;;  %v3600_v26 = vrot.slane %v3593_v13, %v5272_v16  ;;  %v4022_v29 = vrot.slane %v4015_v55, %v5272_v16 }
 0xca1   :  { %1661 = vst.msk [vmem:[#allocation20] sm:$0x1] %vm1660_vm3, %v1658_v14  ;;  %v3671_v14 = vpack.c.b16 %v3670_v23, %v3670_v23  ;;  %v3942_v56 = vrot.slane %v3935_v54, %v5272_v16 }
 0xca2   :  { %2844 = vrot.lane.b32.xlu0 %v2843_v15, %s5010_s16  ;;  %v3755_v15 = vsel %vm623_vm5, %v3754_v28, %v3752_v43  ;;  %v3840_v32 = vsel %vm623_vm5, %v3753_v5, %v3839_v38  ;;  %v4029_v57 = vrot.slane %v4022_v29, %v5272_v16 }
 0xca3   :  { %v3678_v30 = vrot.slane %v3671_v14, %v5272_v16  ;;  %v3756_v17 = vpack.c.b16 %v3755_v15, %v3755_v15 }
 0xca4   :  { %v1744_v49 = vpop.permute.xlu1 %1743 }
 0xca5   :  { %1747 = vst.msk [vmem:[#allocation20] sm:$0x1] %vm1746_vm4, %v1744_v49  ;;  %v3685_v40 = vrot.slane %v3678_v30, %v5272_v16  ;;  %v3763_v49 = vrot.slane %v3756_v17, %v5272_v16 }
 0xca6   :  { %2929 = vrot.lane.b32.xlu0 %v2928_v50, %s5011_s12  ;;  %v3841_v50 = vpack.c.b16 %v3840_v32, %v3840_v32 }
 0xca7   :  { %v3770_v39 = vrot.slane %v3763_v49, %v5272_v16 }
 0xca8   :  { %v1830_v37 = vpop.permute.xlu1 %1829  ;;  %v3848_v52 = vrot.slane %v3841_v50, %v5272_v16 }
 0xca9   :  { %1833 = vst.msk [vmem:[#allocation20] sm:$0x1] %vm1832_vm6, %v1830_v37 }
 0xcaa   :  { %3016 = vrot.lane.b32.xlu0 %v3015_v8, %s5012_s13  ;;  %v3855_v53 = vrot.slane %v3848_v52, %v5272_v16 }
 0xcac   :  { %v1916_v63 = vpop.permute.xlu1 %1915 }
 0xcad   :  { %1919 = vst.msk [vmem:[#allocation20] sm:$0x1] %vm1918_vm7, %v1916_v63  ;;  %v4533_v63 = vld [vmem:[%s5842_s8] ss:$0 sm:$0xff]  ;;  %s4397_s8 = sshll.u32 %s5018_s7, 4  ;;  %s4398_s8 = int_to_ptr.vmem [resolvable:$true] %s4397_s8 }
 0xcae   :  { %3103 = vrot.lane.b32.xlu0 %v3102_v1, %s5013_s2  ;;  %p4941_p7 = scmp.lt.s32.totalorder %s4398_s8, %s4398_s8 }
 0xcb0   :  { %v2002_v7 = vpop.permute.xlu1 %2001 }
 0xcb1   :  { %2005 = vst.msk [vmem:[#allocation20] sm:$0x1] %vm5845_vm8, %v2002_v7  ;;  %vm2180_vm8 = vcmask 1041344  }
 0xcb2   :  { %3433 = vrot.lane.b32.xlu0 %v3432_v47, %s4994_s25 }
 0xcb4   :  { %v2090_v6 = vpop.permute.xlu1 %2089 }
 0xcb5   :  { %2093 = vst.msk [vmem:[#allocation20] sm:$0x1] %vm2092_vm9, %v2090_v6 }
 0xcb6   :  { %3516 = vrot.lane.b32.xlu0 %v3515_v12, %s5014_s22 }
 0xcb8   :  { %v2178_v46 = vpop.permute.xlu1 %2177 }
 0xcb9   :  { %2181 = vst.msk [vmem:[#allocation20] sm:$0x1] %vm2180_vm8, %v2178_v46 }
 0xcba   :  { %3601 = vrot.lane.b32.xlu0 %v3600_v26, %s5015_s15 }
 0xcbe   :  { %3686 = vrot.lane.b32.xlu0 %v3685_v40, %s5016_s17 }
 0xcc2   :  { %3771 = vrot.lane.b32.xlu0 %v3770_v39, %s5017_s18 }
 0xcc6   :  { %3856 = vrot.lane.b32.xlu0 %v3855_v53, %s5006_s29 }
 0xcca   :  { %3943 = vrot.lane.b32.xlu0 %v3942_v56, %s5005_s28 }
 0xcce   :  { %4030 = vrot.lane.b32.xlu0 %v4029_v57, %s5002_s5 }
 0xd0d   :  { %v4115_v37 = vpop.xlane.xlu0 %4114 }
 0xd0e   :  { %v4117_v8 = vmul.f32 0.03125, %v4115_v37 }
 0xd10   :  { %v4119_v41 = vadd.f32 1e-06, %v4117_v8 }
 0xd11   :  { %v4112_v58 = vpop.xlane.xlu0 %4111 }
 0xd12   :  { %4800 = vrsqrt.f32 %v4119_v41  ;;  %v4116_v59 = vmul.f32 0.03125, %v4112_v58 }
 0xd14   :  { %v4118_v21 = vadd.f32 1e-06, %v4116_v59 }
 0xd15   :  { %v2590_v9 = vpop.permute.xlu0 %2589 }
 0xd16   :  { %4802 = vrsqrt.f32 %v4118_v21  ;;  %2592 = vst.msk [vmem:[#allocation20 + $0x1] sm:$0x1] %vm725_vm10, %v2590_v9  ;;  %vm4168_vm10 = vcmask 1043459  }
 0xd17   :  { %2677 = vst.msk [vmem:[#allocation20 + $0x1] sm:$0x1] %vm811_vm11, %v5637_v45  ;;  %vm4170_vm11 = vcmask 1045509  }
 0xd19   :  { %v2760_v60 = vpop.permute.xlu0 %2759 }
 0xd1a   :  { %2762 = vst.msk [vmem:[#allocation20 + $0x1] sm:$0x1] %vm897_vm12, %v2760_v60  ;;  %vm4172_vm12 = vcmask 1047559  }
 0xd1c   :  { %v4801_v16 = vpop.eup %4800 }
 0xd1d   :  { %v4123_v0 = vmul.f32 %v4801_v16, %v5621_v31  ;;  %v2845_v11 = vpop.permute.xlu0 %2844 }
 0xd1e   :  { %2847 = vst.msk [vmem:[#allocation20 + $0x1] sm:$0x1] %vm983_vm13, %v2845_v11  ;;  %vm5846_vm13 = vcmask 910144  }
 0xd1f   :  { %v4132_v1 = vmul.f32 %v4532_v61, %v4123_v0 }
 0xd20   :  { %v4803_v44 = vpop.eup %4802 }
 0xd21   :  { %v4141_v45 = vadd.f32 %v4533_v63, %v4132_v1  ;;  %v4122_v2 = vmul.f32 %v4803_v44, %v5618_v48  ;;  %v2930_v62 = vpop.permute.xlu0 %2929 }
 0xd22   :  { %2932 = vst.msk [vmem:[#allocation20 + $0x1] sm:$0x1] %vm1069_vm14, %v2930_v62 }
 0xd23   :  { %4143 = vst.msk [vmem:[#allocation7 + $0x8] sm:$0xff] %vm146_vm1, %v4141_v45  ;;  %v4131_v5 = vmul.f32 %v4532_v61, %v4122_v2 }
 0xd25   :  { %v4140_v25 = vadd.f32 %v4533_v63, %v4131_v5  ;;  %v3017_v31 = vpop.permute.xlu0 %3016 }
 0xd26   :  { %3019 = vst.msk [vmem:[#allocation20 + $0x1] sm:$0x1] %vm1157_vm15, %v3017_v31 }
 0xd27   :  { %4142 = vst.msk [vmem:[#allocation7] sm:$0xff] %vm146_vm1, %v4140_v25  ;;  %vm4175_vm1 = vcmask 254976  }
 0xd29   :  { %v3104_v3 = vpop.permute.xlu0 %3103 }
 0xd2a   :  { %3106 = vst.msk [vmem:[#allocation20 + $0x1] sm:$0x1] %vm1245_vm0, %v3104_v3  ;;  %v4545_v4 = vld.sshfl [vmem:[#allocation7 + $0xd] sm:$0x1 pattern:$0x76325410] }
 0xd2b   :  { %v4537_v35 = vld.sshfl [vmem:[#allocation7 + $0x9] sm:$0x1 pattern:$0x76325410]  ;;  %v4314_v48 = vrot.slane %v4545_v4, 7 }
 0xd2c   :  { %v4547_v7 = vld.sshfl [vmem:[#allocation7 + $0xe] sm:$0x1 pattern:$0x76325410]  ;;  %v4197_v23 = vrot.slane %v4537_v35, 7 }
 0xd2d   :  { %v3434_v47 = vpop.permute.xlu0 %3433  ;;  %v4539_v22 = vld.sshfl [vmem:[#allocation7 + $0xa] sm:$0x1 pattern:$0x76325410]  ;;  %v4343_v43 = vrot.slane %v4547_v7, 7 }
 0xd2e   :  { %3436 = vst.msk [vmem:[#allocation20 + $0x1] sm:$0x1] %vm1576_vm2, %v3434_v47  ;;  %v4544_v36 = vld.sshfl [vmem:[#allocation7 + $0x5] sm:$0x1 pattern:$0x76325410] }
 0xd2f   :  { %v4315_v28 = vsel %vm623_vm5, %v4314_v48, %v4544_v36  ;;  %v4536_v10 = vld.sshfl [vmem:[#allocation7 + $0x1] sm:$0x1 pattern:$0x76325410]  ;;  %v4227_v13 = vrot.slane %v4539_v22, 7 }
 0xd30   :  { %v4316_v27 = vsel %vm4168_vm10, %v4314_v48, %v4315_v28  ;;  %v4198_v6 = vsel %vm623_vm5, %v4197_v23, %v4536_v10  ;;  %v4546_v12 = vld.sshfl [vmem:[#allocation7 + $0x6] sm:$0x1 pattern:$0x76325410] }
 0xd31   :  { %v3517_v14 = vpop.permute.xlu0 %3516  ;;  %v4317_v15 = vsel %vm4170_vm11, %v4314_v48, %v4316_v27  ;;  %v4199_v33 = vsel %vm4168_vm10, %v4197_v23, %v4198_v6  ;;  %v4344_v38 = vsel %vm623_vm5, %v4343_v43, %v4546_v12  ;;  %v4538_v20 = vld.sshfl [vmem:[#allocation7 + $0x2] sm:$0x1 pattern:$0x76325410] }
 0xd32   :  { %3519 = vst.msk [vmem:[#allocation20 + $0x1] sm:$0x1] %vm1660_vm3, %v3517_v14  ;;  %v4318_v46 = vsel %vm4172_vm12, %v4314_v48, %v4317_v15  ;;  %v4200_v26 = vsel %vm4170_vm11, %v4197_v23, %v4199_v33  ;;  %v4345_v30 = vsel %vm4168_vm10, %v4343_v43, %v4344_v38  ;;  %v4228_v17 = vsel %vm623_vm5, %v4227_v13, %v4538_v20  ;;  %v4548_v32 = vld.sshfl [vmem:[#allocation7 + $0x7] sm:$0x1 pattern:$0x76325410] }
 0xd33   :  { %4319 = vrot.lane.b32.xlu0 %v4318_v46, %s5010_s16  ;;  %v4201_v42 = vsel %vm4172_vm12, %v4197_v23, %v4200_v26  ;;  %v4346_v34 = vsel %vm4170_vm11, %v4343_v43, %v4345_v30  ;;  %v4229_v40 = vsel %vm4168_vm10, %v4227_v13, %v4228_v17  ;;  %v4549_v49 = vld.sshfl [vmem:[#allocation7 + $0xf] sm:$0x1 pattern:$0x76325410] }
 0xd34   :  { %4202 = vrot.lane.b32.xlu1 %v4201_v42, %s5010_s16  ;;  %v4230_v50 = vsel %vm4170_vm11, %v4227_v13, %v4229_v40  ;;  %v4372_v18 = vrot.slane %v4549_v49, 7  ;;  %v4540_v51 = vld.sshfl [vmem:[#allocation7 + $0x3] sm:$0x1 pattern:$0x76325410]  ;;  %v4347_v24 = vsel %vm4172_vm12, %v4343_v43, %v4346_v34 }
 0xd35   :  { %v3602_v39 = vpop.permute.xlu0 %3601  ;;  %v4541_v52 = vld.sshfl [vmem:[#allocation7 + $0xb] sm:$0x1 pattern:$0x76325410]  ;;  %v4231_v55 = vsel %vm4172_vm12, %v4227_v13, %v4230_v50 }
 0xd36   :  { %3604 = vst.msk [vmem:[#allocation20 + $0x1] sm:$0x1] %vm1746_vm4, %v3602_v39  ;;  %v4373_v19 = vsel %vm623_vm5, %v4372_v18, %v4548_v32  ;;  %v4257_v53 = vrot.slane %v4541_v52, 7 }
 0xd37   :  { %v4542_v54 = vld.sshfl [vmem:[#allocation7 + $0x4] sm:$0x1 pattern:$0x76325410]  ;;  %4348 = vrot.lane.b32.xlu0 %v4347_v24, %s4994_s25  ;;  %v4374_v56 = vsel %vm4168_vm10, %v4372_v18, %v4373_v19 }
 0xd38   :  { %v4543_v29 = vld.sshfl [vmem:[#allocation7 + $0xc] sm:$0x1 pattern:$0x76325410]  ;;  %4232 = vrot.lane.b32.xlu1 %v4231_v55, %s4994_s25  ;;  %v4375_v57 = vsel %vm4170_vm11, %v4372_v18, %v4374_v56  ;;  %v4258_v37 = vsel %vm623_vm5, %v4257_v53, %v4540_v51  ;;  %s4936_s25 = scalar_lea.vmem %s4398_s8, 32 }
 0xd39   :  { %v4287_v8 = vrot.slane %v4543_v29, 7  ;;  %v4534_v41 = vld.sshfl [vmem:[#allocation7] sm:$0x1 pattern:$0x76325410]  ;;  %v3687_v58 = vpop.permute.xlu0 %3686  ;;  %v4259_v59 = vsel %vm4168_vm10, %v4257_v53, %v4258_v37  ;;  %v4376_v9 = vsel %vm4172_vm12, %v4372_v18, %v4375_v57  ;;  %p4937_p6 = scmp.ne.s32.totalorder %s4398_s8, %s4936_s25  ;;  %p4942_p8 = scmp.lt.s32.totalorder %s4936_s25, %s4936_s25 }
 0xd3a   :  { %v4535_v21 = vld.sshfl [vmem:[#allocation7 + $0x8] sm:$0x1 pattern:$0x76325410]  ;;  %3689 = vst.msk [vmem:[#allocation20 + $0x1] sm:$0x1] %vm1832_vm6, %v3687_v58  ;;  %v4260_v60 = vsel %vm4170_vm11, %v4257_v53, %v4259_v59 }
 0xd3b   :  { %v4288_v16 = vsel %vm623_vm5, %v4287_v8, %v4542_v54  ;;  %v4166_v61 = vrot.slane %v4535_v21, 7  ;;  %4377 = vrot.lane.b32.xlu0 %v4376_v9, %s5017_s18  ;;  %v4261_v0 = vsel %vm4172_vm12, %v4257_v53, %v4260_v60  ;;  %p4943_p9 = por %p4942_p8, %p4941_p7 }
 0xd3c   :  { %v4289_v11 = vsel %vm4168_vm10, %v4287_v8, %v4288_v16  ;;  %4262 = vrot.lane.b32.xlu1 %v4261_v0, %s5017_s18 }
 0xd3d   :  { %v4290_v63 = vsel %vm4170_vm11, %v4287_v8, %v4289_v11  ;;  %v4167_v1 = vsel %vm623_vm5, %v4166_v61, %v4534_v41  ;;  %v3772_v44 = vpop.permute.xlu0 %3771  ;;  %p4944_p10 = pnand %p4943_p9, %p4937_p6 }
 0xd3e   :  { %v4291_v45 = vsel %vm4172_vm12, %v4287_v8, %v4290_v63  ;;  %v4169_v2 = vsel %vm4168_vm10, %v4166_v61, %v4167_v1  ;;  %3774 = vst.msk [vmem:[#allocation20 + $0x1] sm:$0x1] %vm1918_vm7, %v3772_v44 }
 0xd3f   :  { %4293 = vst.msk [vmem:[#allocation19 + $0x2] sm:$0x3] %vm4175_vm1, %v4291_v45  ;;  %v4171_v62 = vsel %vm4170_vm11, %v4166_v61, %v4169_v2 }
 0xd40   :  { %v4173_v5 = vsel %vm4172_vm12, %v4166_v61, %v4171_v62 }
 0xd41   :  { %4176 = vst.msk [vmem:[#allocation19] sm:$0x3] %vm4175_vm1, %v4173_v5  ;;  %v3857_v25 = vpop.permute.xlu0 %3856 }
 0xd42   :  { %3859 = vst.msk [vmem:[#allocation20 + $0x1] sm:$0x1] %vm5846_vm13, %v3857_v25 }
 0xd45   :  { %v3944_v31 = vpop.permute.xlu0 %3943 }
 0xd46   :  { %3946 = vst.msk [vmem:[#allocation20 + $0x1] sm:$0x1] %vm2092_vm9, %v3944_v31 }
 0xd49   :  { %v4031_v3 = vpop.permute.xlu0 %4030 }
 0xd4a   :  { %4033 = vst.msk [vmem:[#allocation20 + $0x1] sm:$0x1] %vm2180_vm8, %v4031_v3 }
 0xd4b   :  { %4947 = shalt.err (!%p4944_p10)
}
 0xd4c   :  { %s4948_s4 = scalar_lea.hbm %s5844_s10, 32 }
 0xd4d   :  { %p4949_p11 = scmp.ne.s32.totalorder %s5844_s10, %s4948_s4  ;;  %p4952_p12 = scmp.lt.u32.totalorder %s4948_s4, %s5844_s10 }
 0xd4f   :  { %p4954_p13 = pnand %p4952_p12, %p4949_p11 }
 0xd51   :  { %4957 = shalt.err (!%p4954_p13)
}
 0xd52   :  { %4400 = dma.vmem_to_hbm [thread:$0]  %s4398_s8, 32, %s5844_s10, [#allocation21]   ;;  %vm4205_vm5 = vcmask 517376   ;;  %vm4235_vm14 = vcmask 779776   ;;  %vm4265_vm15 = vcmask 1042176  }
 0xd53   :  { %s5019_s28 = smov [#allocation19]  }
 0xd54   :  { %s4387_s29 = sshll.u32 %s5019_s28, 4  ;;  %s4388_s29 = int_to_ptr.vmem [resolvable:$true] %s4387_s29 }
 0xd55   :  { %s4958_s30 = scalar_lea.vmem %s4388_s29, 64  ;;  %p4963_p1 = scmp.lt.s32.totalorder %s4388_s29, %s4388_s29 }
 0xd56   :  { %p4959_p0 = scmp.ne.s32.totalorder %s4388_s29, %s4958_s30  ;;  %p4964_p2 = scmp.lt.s32.totalorder %s4958_s30, %s4958_s30 }
 0xd58   :  { %p4965_p3 = por %p4964_p2, %p4963_p1 }
 0xd5a   :  { %p4966_p4 = pnand %p4965_p3, %p4959_p0 }
 0xda5   :  { %v4320_v4 = vpop.permute.xlu0 %4319 }
 0xda6   :  { %4322 = vst.msk [vmem:[#allocation19 + $0x2] sm:$0x3] %vm4205_vm5, %v4320_v4  ;;  %v4203_v35 = vpop.permute.xlu1 %4202 }
 0xda7   :  { %4206 = vst.msk [vmem:[#allocation19] sm:$0x3] %vm4205_vm5, %v4203_v35 }
 0xda9   :  { %v4349_v7 = vpop.permute.xlu0 %4348 }
 0xdaa   :  { %4351 = vst.msk [vmem:[#allocation19 + $0x2] sm:$0x3] %vm4235_vm14, %v4349_v7  ;;  %v4233_v47 = vpop.permute.xlu1 %4232 }
 0xdab   :  { %4236 = vst.msk [vmem:[#allocation19] sm:$0x3] %vm4235_vm14, %v4233_v47 }
 0xdad   :  { %v4378_v48 = vpop.permute.xlu0 %4377 }
 0xdae   :  { %v4263_v22 = vpop.permute.xlu1 %4262  ;;  %4380 = vst.msk [vmem:[#allocation19 + $0x2] sm:$0x3] %vm4265_vm15, %v4378_v48 }
 0xdaf   :  { %4266 = vst.msk [vmem:[#allocation19] sm:$0x3] %vm4265_vm15, %v4263_v22 }
 0xdb0   :  { %4969 = shalt.err (!%p4966_p4)
}
 0xdb1   :  { %s4970_s3 = scalar_lea.hbm %s5843_s9, 64 }
 0xdb2   :  { %p4971_p5 = scmp.ne.s32.totalorder %s5843_s9, %s4970_s3  ;;  %p4974_p6 = scmp.lt.u32.totalorder %s4970_s3, %s5843_s9 }
 0xdb4   :  { %p4976_p7 = pnand %p4974_p6, %p4971_p5 }
 0xdb6   :  { %4979 = shalt.err (!%p4976_p7)
}
 0xdb7   :  { %4390 = dma.vmem_to_hbm [thread:$0]  %s4388_s29, 64, %s5843_s9, [#allocation10]  }
 0xdb8   :  { %4988 = dma.done.wait [#allocation10], 64  }
 0xdb9   :  { %4989 = vsyncadd [#allocation10], 4294967232 }
 0xdba   :  { %4990 = dma.done.wait [#allocation21], 32  }
 0xdbb   :  { %4991 = vsyncadd [#allocation21], 4294967264 }
 0xdbc   :  { %4407 = vsyncpa [#allocation9], 1 }
 0xdbd   :  { %4408 = vsyncpa [#allocation12], 1 }
 0xdbe   :  { %4409 = vsyncpa [#allocation15], 1 }
 0xdbf   :  { %4410 = vsyncpa [#allocation18], 1 }
 0xdc0   :  { %4411 = vsyncpa [#allocation10], 1 }
 0xdc1   :  { %4412 = vsyncpa [#allocation21], 1 }

</bundles_post_ra>
